<compile_context>
chip_gen: v7x
topology: tpu7x:2x2x1
jax: 0.10.0
libtpu: 0.0.40
codegen_flags: <defaults>
</compile_context>

<pallas_src>
import jax
import jax.numpy as jnp
from jax.experimental import pallas as pl
from jax.experimental.pallas import tpu as pltpu


def _tisas_attn_kernel(q_in_ref, k_in_ref,
                       wq_ref, bq_ref, wk_ref, bk_ref, wv_ref, bv_ref,
                       pos_k_ref, pos_v_ref, tmk_ref, tmv_ref,
                       tmask_ref, amask_ref, smask_ref,
                       o_ref):
    x_q = q_in_ref[0]                      # (L, H)
    x_k = k_in_ref[0]                      # (L, H)

    # Per-head projections (Linear: y = x @ W_h + b_h), f32 MXU accumulation.
    q = jnp.dot(x_q, wq_ref[0], preferred_element_type=jnp.float32) + bq_ref[0]
    k = jnp.dot(x_k, wk_ref[0], preferred_element_type=jnp.float32) + bk_ref[0]
    v = jnp.dot(x_k, wv_ref[0], preferred_element_type=jnp.float32) + bv_ref[0]

    pos_k = pos_k_ref[0, 0]                # (L, d)
    pos_v = pos_v_ref[0, 0]                # (L, d)
    tmk = tmk_ref[0, 0]                    # (L, L, d)
    tmv = tmv_ref[0, 0]                    # (L, L, d)

    # Attention logits: content + absolute-position + relative-time terms.
    logits = jnp.dot(q, k.T, preferred_element_type=jnp.float32)
    logits += jnp.dot(q, pos_k.T, preferred_element_type=jnp.float32)
    logits += jnp.sum(tmk * q[:, None, :], axis=-1)    # einsum('ijd,id->ij')
    d = q.shape[-1]
    logits = logits * jnp.float32(1.0 / (d ** 0.5))

    neg = jnp.float32(-2 ** 32 + 1)
    masked = (tmask_ref[0] != 0) | (amask_ref[...] != 0) | (smask_ref[0] != 0)
    logits = jnp.where(masked, neg, logits)

    # Softmax over keys.
    m = jnp.max(logits, axis=-1, keepdims=True)
    e = jnp.exp(logits - m)
    p = e / jnp.sum(e, axis=-1, keepdims=True)

    # Output: content + absolute-position + relative-time value contributions.
    out = jnp.dot(p, v, preferred_element_type=jnp.float32)
    out += jnp.dot(p, pos_v, preferred_element_type=jnp.float32)
    out += jnp.sum(p[:, :, None] * tmv, axis=1)        # einsum('ij,ijd->id')

    o_ref[0, 0] = out.astype(o_ref.dtype)


def time_aware_mha(queries, keys, time_mask, attn_mask, same_time_mask,
                   time_matrix_K, time_matrix_V, abs_pos_K, abs_pos_V,
                   wq, bq, wk, bk, wv, bv, *, head_num):
    """Pallas implementation of TimeAwareMultiHeadAttention.forward (eval mode)."""
    B, L, H = queries.shape
    assert H % head_num == 0
    d = H // head_num
    f32 = jnp.float32

    # Head-major layouts so every BlockSpec block is a full-extent, lane-aligned tile.
    def heads_weight(w):   # PyTorch (H_out, H_in) -> (nH, H_in, d): y_h = x @ w_h
        return w.reshape(head_num, d, H).transpose(0, 2, 1).astype(f32)

    def heads_bias(b):     # (H,) -> (nH, 1, d)
        return b.reshape(head_num, 1, d).astype(f32)

    def heads_pos(p):      # (B, L, H) -> (nH, B, L, d)
        return p.reshape(B, L, head_num, d).transpose(2, 0, 1, 3).astype(f32)

    def heads_time(t):     # (B, L, L, H) -> (nH, B, L, L, d)
        return t.reshape(B, L, L, head_num, d).transpose(3, 0, 1, 2, 4).astype(f32)

    tmask = time_mask.astype(f32).reshape(B, L, 1)   # True(=1.0) masks whole row i
    amask = attn_mask.astype(f32)                    # (L, L) causal mask
    smask = same_time_mask.astype(f32)               # (B, L, L)

    out_hb = pl.pallas_call(
        _tisas_attn_kernel,
        out_shape=jax.ShapeDtypeStruct((head_num, B, L, d), f32),
        grid_spec=pltpu.PrefetchScalarGridSpec(
            num_scalar_prefetch=0,
            grid=(head_num, B),
            in_specs=[
                pl.BlockSpec((1, L, H), lambda h, b: (b, 0, 0)),              # queries
                pl.BlockSpec((1, L, H), lambda h, b: (b, 0, 0)),              # keys
                pl.BlockSpec((1, H, d), lambda h, b: (h, 0, 0)),              # Wq head
                pl.BlockSpec((1, 1, d), lambda h, b: (h, 0, 0)),              # bq head
                pl.BlockSpec((1, H, d), lambda h, b: (h, 0, 0)),              # Wk head
                pl.BlockSpec((1, 1, d), lambda h, b: (h, 0, 0)),              # bk head
                pl.BlockSpec((1, H, d), lambda h, b: (h, 0, 0)),              # Wv head
                pl.BlockSpec((1, 1, d), lambda h, b: (h, 0, 0)),              # bv head
                pl.BlockSpec((1, 1, L, d), lambda h, b: (h, b, 0, 0)),        # abs_pos_K head
                pl.BlockSpec((1, 1, L, d), lambda h, b: (h, b, 0, 0)),        # abs_pos_V head
                pl.BlockSpec((1, 1, L, L, d), lambda h, b: (h, b, 0, 0, 0)),  # time_matrix_K head
                pl.BlockSpec((1, 1, L, L, d), lambda h, b: (h, b, 0, 0, 0)),  # time_matrix_V head
                pl.BlockSpec((1, L, 1), lambda h, b: (b, 0, 0)),              # time_mask
                pl.BlockSpec((L, L), lambda h, b: (0, 0)),                    # attn_mask
                pl.BlockSpec((1, L, L), lambda h, b: (b, 0, 0)),              # same_time_mask
            ],
            out_specs=pl.BlockSpec((1, 1, L, d), lambda h, b: (h, b, 0, 0)),
        ),
        compiler_params=pltpu.CompilerParams(
            dimension_semantics=("parallel", "parallel")),
    )(queries.astype(f32), keys.astype(f32),
      heads_weight(wq), heads_bias(bq),
      heads_weight(wk), heads_bias(bk),
      heads_weight(wv), heads_bias(bv),
      heads_pos(abs_pos_K), heads_pos(abs_pos_V),
      heads_time(time_matrix_K), heads_time(time_matrix_V),
      tmask, amask, smask)

    # (nH, B, L, d) -> (B, L, nH*d) == torch.cat(torch.split(outputs, B, 0), 2)
    return out_hb.transpose(1, 2, 0, 3).reshape(B, L, H)


def reference_tisas_mha(queries, keys, time_mask, attn_mask, same_time_mask,
                        time_matrix_K, time_matrix_V, abs_pos_K, abs_pos_V,
                        wq, bq, wk, bk, wv, bv, *, head_num):
    """Pure-JAX transcription of the PyTorch forward (eval mode)."""
    B, L, H = queries.shape
    d = H // head_num

    Q = queries @ wq.T + bq
    K = keys @ wk.T + bk
    V = keys @ wv.T + bv

    def split_cat(x, axis):
        return jnp.concatenate(jnp.split(x, head_num, axis=axis), axis=0)

    Q_, K_, V_ = split_cat(Q, 2), split_cat(K, 2), split_cat(V, 2)
    tK_ = split_cat(time_matrix_K, 3)
    tV_ = split_cat(time_matrix_V, 3)
    pK_ = split_cat(abs_pos_K, 2)
    pV_ = split_cat(abs_pos_V, 2)

    attn = Q_ @ jnp.swapaxes(K_, 1, 2)
    attn += Q_ @ jnp.swapaxes(pK_, 1, 2)
    attn += jnp.einsum('bijd,bid->bij', tK_, Q_)
    attn = attn / (d ** 0.5)

    neg = jnp.float32(-2 ** 32 + 1)
    tm = jnp.broadcast_to(jnp.tile(time_mask[:, :, None], (head_num, 1, 1)), attn.shape)
    am = jnp.broadcast_to(attn_mask[None, :, :], attn.shape)
    sm = jnp.tile(same_time_mask, (head_num, 1, 1))
    attn = jnp.where(tm, neg, attn)
    attn = jnp.where(am, neg, attn)
    attn = jnp.where(sm, neg, attn)
    attn = jax.nn.softmax(attn, axis=-1)

    out = attn @ V_
    out += attn @ pV_
    out += jnp.einsum('bij,bijd->bid', attn, tV_)
    return jnp.concatenate(jnp.split(out, head_num, axis=0), axis=2)


if __name__ == "__main__":
    # Keep the reference matmuls in full f32 so the tolerance check is meaningful.
    jax.config.update("jax_default_matmul_precision", "highest")

    B, L, H, head_num = 2, 8, 32, 2
    key = jax.random.PRNGKey(0)
    ks = jax.random.split(key, 13)

    queries = jax.random.normal(ks[0], (B, L, H), jnp.float32)
    keys_in = jax.random.normal(ks[1], (B, L, H), jnp.float32)
    time_matrix_K = jax.random.normal(ks[2], (B, L, L, H), jnp.float32)
    time_matrix_V = jax.random.normal(ks[3], (B, L, L, H), jnp.float32)
    abs_pos_K = jax.random.normal(ks[4], (B, L, H), jnp.float32)
    abs_pos_V = jax.random.normal(ks[5], (B, L, H), jnp.float32)

    bound = 1.0 / (H ** 0.5)
    wq = jax.random.uniform(ks[6], (H, H), jnp.float32, -bound, bound)
    wk = jax.random.uniform(ks[7], (H, H), jnp.float32, -bound, bound)
    wv = jax.random.uniform(ks[8], (H, H), jnp.float32, -bound, bound)
    bq = jax.random.uniform(ks[9], (H,), jnp.float32, -bound, bound)
    bk = jax.random.uniform(ks[10], (H,), jnp.float32, -bound, bound)
    bv = jax.random.uniform(ks[11], (H,), jnp.float32, -bound, bound)

    # Masks: True == masked out (same convention as the PyTorch module).
    time_mask = jnp.arange(L)[None, :] < jnp.array([[2], [0]])     # padded positions
    attn_mask = ~jnp.tril(jnp.ones((L, L), dtype=bool))            # causal mask
    same_time_mask = jax.random.bernoulli(ks[12], 0.15, (B, L, L))

    out = time_aware_mha(queries, keys_in, time_mask, attn_mask, same_time_mask,
                         time_matrix_K, time_matrix_V, abs_pos_K, abs_pos_V,
                         wq, bq, wk, bk, wv, bv, head_num=head_num)
    out = jax.block_until_ready(out)

    ref = reference_tisas_mha(queries, keys_in, time_mask, attn_mask, same_time_mask,
                              time_matrix_K, time_matrix_V, abs_pos_K, abs_pos_V,
                              wq, bq, wk, bk, wv, bv, head_num=head_num)

    assert out.shape == (B, L, H)
    err = float(jnp.max(jnp.abs(out - ref)))
    assert jnp.allclose(out, ref, atol=1e-3, rtol=1e-3), f"mismatch vs reference (max abs err={err})"

    print("KERNEL_OK")
</pallas_src>

<mosaic_0001>
module attributes {stable_mosaic.version = 11 : i64} {
  func.func @_tisas_attn_kernel(%arg0: i32, %arg1: i32, %arg2: memref<1x8x32xf32, #tpu.memory_space<vmem>>, %arg3: memref<1x8x32xf32, #tpu.memory_space<vmem>>, %arg4: memref<1x32x16xf32, #tpu.memory_space<vmem>>, %arg5: memref<1x1x16xf32, #tpu.memory_space<vmem>>, %arg6: memref<1x32x16xf32, #tpu.memory_space<vmem>>, %arg7: memref<1x1x16xf32, #tpu.memory_space<vmem>>, %arg8: memref<1x32x16xf32, #tpu.memory_space<vmem>>, %arg9: memref<1x1x16xf32, #tpu.memory_space<vmem>>, %arg10: memref<1x1x8x16xf32, #tpu.memory_space<vmem>>, %arg11: memref<1x1x8x16xf32, #tpu.memory_space<vmem>>, %arg12: memref<1x1x8x8x16xf32, #tpu.memory_space<vmem>>, %arg13: memref<1x1x8x8x16xf32, #tpu.memory_space<vmem>>, %arg14: memref<1x8x1xf32, #tpu.memory_space<vmem>>, %arg15: memref<8x8xf32, #tpu.memory_space<vmem>>, %arg16: memref<1x8x8xf32, #tpu.memory_space<vmem>>, %arg17: memref<1x1x8x16xf32, #tpu.memory_space<vmem>>) attributes {dimension_semantics = [#tpu.dimension_semantics<parallel>, #tpu.dimension_semantics<parallel>], iteration_bounds = array<i64: 2, 2>, scalar_prefetch = 0 : i64, scratch_operands = 0 : i64, tpu.core_type = #tpu.core_type<tc>, window_params = [{transform_indices = @transform_0, window_bounds = array<i64: 1, 8, 32>}, {transform_indices = @transform_1, window_bounds = array<i64: 1, 8, 32>}, {transform_indices = @transform_2, window_bounds = array<i64: 1, 32, 16>}, {transform_indices = @transform_3, window_bounds = array<i64: 1, 1, 16>}, {transform_indices = @transform_4, window_bounds = array<i64: 1, 32, 16>}, {transform_indices = @transform_5, window_bounds = array<i64: 1, 1, 16>}, {transform_indices = @transform_6, window_bounds = array<i64: 1, 32, 16>}, {transform_indices = @transform_7, window_bounds = array<i64: 1, 1, 16>}, {transform_indices = @transform_8, window_bounds = array<i64: 1, 1, 8, 16>}, {transform_indices = @transform_9, window_bounds = array<i64: 1, 1, 8, 16>}, {transform_indices = @transform_10, window_bounds = array<i64: 1, 1, 8, 8, 16>}, {transform_indices = @transform_11, window_bounds = array<i64: 1, 1, 8, 8, 16>}, {transform_indices = @transform_12, window_bounds = array<i64: 1, 8, 1>}, {pipeline_mode = #tpu.pipeline_mode<synchronous>, transform_indices = @transform_13, window_bounds = array<i64: 8, 8>}, {transform_indices = @transform_14, window_bounds = array<i64: 1, 8, 8>}, {transform_indices = @transform_15, window_bounds = array<i64: 1, 1, 8, 16>}]} {
    %c0 = arith.constant 0 : index
    %c0_0 = arith.constant 0 : index
    %c0_1 = arith.constant 0 : index
    %0 = vector.load %arg2[%c0, %c0_0, %c0_1] : memref<1x8x32xf32, #tpu.memory_space<vmem>>, vector<1x8x32xf32>
    %1 = vector.shape_cast %0 : vector<1x8x32xf32> to vector<8x32xf32>
    %c0_2 = arith.constant 0 : index
    %c0_3 = arith.constant 0 : index
    %c0_4 = arith.constant 0 : index
    %2 = vector.load %arg3[%c0_2, %c0_3, %c0_4] : memref<1x8x32xf32, #tpu.memory_space<vmem>>, vector<1x8x32xf32>
    %3 = vector.shape_cast %2 : vector<1x8x32xf32> to vector<8x32xf32>
    %c0_5 = arith.constant 0 : index
    %c0_6 = arith.constant 0 : index
    %c0_7 = arith.constant 0 : index
    %4 = vector.load %arg4[%c0_5, %c0_6, %c0_7] : memref<1x32x16xf32, #tpu.memory_space<vmem>>, vector<1x32x16xf32>
    %5 = vector.shape_cast %4 : vector<1x32x16xf32> to vector<32x16xf32>
    %cst = arith.constant dense<0.000000e+00> : vector<8x16xf32>
    %6 = tpu.matmul %1, %5, %cst {dimension_numbers = #tpu.dot_dimension_numbers<[1], [0], [0], [1], [0, 0, 1, 1], [], []>, precision = #tpu.contract_precision<fp32>} : vector<8x32xf32>, vector<32x16xf32>, vector<8x16xf32> -> vector<8x16xf32>
    %c0_8 = arith.constant 0 : index
    %c0_9 = arith.constant 0 : index
    %c0_10 = arith.constant 0 : index
    %7 = vector.load %arg5[%c0_8, %c0_9, %c0_10] : memref<1x1x16xf32, #tpu.memory_space<vmem>>, vector<1x1x16xf32>
    %8 = vector.shape_cast %7 : vector<1x1x16xf32> to vector<1x16xf32>
    %9 = vector.broadcast %8 : vector<1x16xf32> to vector<8x16xf32>
    %10 = arith.addf %6, %9 : vector<8x16xf32>
    %c0_11 = arith.constant 0 : index
    %c0_12 = arith.constant 0 : index
    %c0_13 = arith.constant 0 : index
    %11 = vector.load %arg6[%c0_11, %c0_12, %c0_13] : memref<1x32x16xf32, #tpu.memory_space<vmem>>, vector<1x32x16xf32>
    %12 = vector.shape_cast %11 : vector<1x32x16xf32> to vector<32x16xf32>
    %cst_14 = arith.constant dense<0.000000e+00> : vector<8x16xf32>
    %13 = tpu.matmul %3, %12, %cst_14 {dimension_numbers = #tpu.dot_dimension_numbers<[1], [0], [0], [1], [0, 0, 1, 1], [], []>, precision = #tpu.contract_precision<fp32>} : vector<8x32xf32>, vector<32x16xf32>, vector<8x16xf32> -> vector<8x16xf32>
    %c0_15 = arith.constant 0 : index
    %c0_16 = arith.constant 0 : index
    %c0_17 = arith.constant 0 : index
    %14 = vector.load %arg7[%c0_15, %c0_16, %c0_17] : memref<1x1x16xf32, #tpu.memory_space<vmem>>, vector<1x1x16xf32>
    %15 = vector.shape_cast %14 : vector<1x1x16xf32> to vector<1x16xf32>
    %16 = vector.broadcast %15 : vector<1x16xf32> to vector<8x16xf32>
    %17 = arith.addf %13, %16 : vector<8x16xf32>
    %c0_18 = arith.constant 0 : index
    %c0_19 = arith.constant 0 : index
    %c0_20 = arith.constant 0 : index
    %18 = vector.load %arg8[%c0_18, %c0_19, %c0_20] : memref<1x32x16xf32, #tpu.memory_space<vmem>>, vector<1x32x16xf32>
    %19 = vector.shape_cast %18 : vector<1x32x16xf32> to vector<32x16xf32>
    %cst_21 = arith.constant dense<0.000000e+00> : vector<8x16xf32>
    %20 = tpu.matmul %3, %19, %cst_21 {dimension_numbers = #tpu.dot_dimension_numbers<[1], [0], [0], [1], [0, 0, 1, 1], [], []>, precision = #tpu.contract_precision<fp32>} : vector<8x32xf32>, vector<32x16xf32>, vector<8x16xf32> -> vector<8x16xf32>
    %c0_22 = arith.constant 0 : index
    %c0_23 = arith.constant 0 : index
    %c0_24 = arith.constant 0 : index
    %21 = vector.load %arg9[%c0_22, %c0_23, %c0_24] : memref<1x1x16xf32, #tpu.memory_space<vmem>>, vector<1x1x16xf32>
    %22 = vector.shape_cast %21 : vector<1x1x16xf32> to vector<1x16xf32>
    %23 = vector.broadcast %22 : vector<1x16xf32> to vector<8x16xf32>
    %24 = arith.addf %20, %23 : vector<8x16xf32>
    %c0_25 = arith.constant 0 : index
    %c0_26 = arith.constant 0 : index
    %c0_27 = arith.constant 0 : index
    %c0_28 = arith.constant 0 : index
    %25 = vector.load %arg10[%c0_25, %c0_26, %c0_27, %c0_28] : memref<1x1x8x16xf32, #tpu.memory_space<vmem>>, vector<1x1x8x16xf32>
    %26 = vector.shape_cast %25 : vector<1x1x8x16xf32> to vector<8x16xf32>
    %c0_29 = arith.constant 0 : index
    %c0_30 = arith.constant 0 : index
    %c0_31 = arith.constant 0 : index
    %c0_32 = arith.constant 0 : index
    %27 = vector.load %arg11[%c0_29, %c0_30, %c0_31, %c0_32] : memref<1x1x8x16xf32, #tpu.memory_space<vmem>>, vector<1x1x8x16xf32>
    %28 = vector.shape_cast %27 : vector<1x1x8x16xf32> to vector<8x16xf32>
    %c0_33 = arith.constant 0 : index
    %c0_34 = arith.constant 0 : index
    %c0_35 = arith.constant 0 : index
    %c0_36 = arith.constant 0 : index
    %c0_37 = arith.constant 0 : index
    %29 = vector.load %arg12[%c0_33, %c0_34, %c0_35, %c0_36, %c0_37] : memref<1x1x8x8x16xf32, #tpu.memory_space<vmem>>, vector<1x1x8x8x16xf32>
    %30 = vector.shape_cast %29 : vector<1x1x8x8x16xf32> to vector<8x8x16xf32>
    %c0_38 = arith.constant 0 : index
    %c0_39 = arith.constant 0 : index
    %c0_40 = arith.constant 0 : index
    %c0_41 = arith.constant 0 : index
    %c0_42 = arith.constant 0 : index
    %31 = vector.load %arg13[%c0_38, %c0_39, %c0_40, %c0_41, %c0_42] : memref<1x1x8x8x16xf32, #tpu.memory_space<vmem>>, vector<1x1x8x8x16xf32>
    %32 = vector.shape_cast %31 : vector<1x1x8x8x16xf32> to vector<8x8x16xf32>
    %33 = tpu.transpose %17, [1, 0] : vector<8x16xf32> -> vector<16x8xf32>
    %cst_43 = arith.constant dense<0.000000e+00> : vector<8x8xf32>
    %34 = tpu.matmul %10, %33, %cst_43 {dimension_numbers = #tpu.dot_dimension_numbers<[1], [0], [0], [1], [0, 0, 1, 1], [], []>, precision = #tpu.contract_precision<fp32>} : vector<8x16xf32>, vector<16x8xf32>, vector<8x8xf32> -> vector<8x8xf32>
    %35 = tpu.transpose %26, [1, 0] : vector<8x16xf32> -> vector<16x8xf32>
    %cst_44 = arith.constant dense<0.000000e+00> : vector<8x8xf32>
    %36 = tpu.matmul %10, %35, %cst_44 {dimension_numbers = #tpu.dot_dimension_numbers<[1], [0], [0], [1], [0, 0, 1, 1], [], []>, precision = #tpu.contract_precision<fp32>} : vector<8x16xf32>, vector<16x8xf32>, vector<8x8xf32> -> vector<8x8xf32>
    %37 = arith.addf %34, %36 : vector<8x8xf32>
    %38 = vector.shape_cast %10 : vector<8x16xf32> to vector<8x1x16xf32>
    %39 = vector.broadcast %38 : vector<8x1x16xf32> to vector<8x8x16xf32>
    %40 = arith.mulf %30, %39 : vector<8x8x16xf32>
    %cst_45 = arith.constant dense<0.000000e+00> : vector<8x8xf32>
    %41 = vector.multi_reduction <add>, %40, %cst_45 [2] : vector<8x8x16xf32> to vector<8x8xf32>
    %42 = arith.addf %37, %41 : vector<8x8xf32>
    %cst_46 = arith.constant 2.500000e-01 : f32
    %43 = vector.broadcast %cst_46 : f32 to vector<8x8xf32>
    %44 = arith.mulf %42, %43 : vector<8x8xf32>
    %c0_47 = arith.constant 0 : index
    %c0_48 = arith.constant 0 : index
    %c0_49 = arith.constant 0 : index
    %45 = vector.load %arg14[%c0_47, %c0_48, %c0_49] : memref<1x8x1xf32, #tpu.memory_space<vmem>>, vector<1x8x1xf32>
    %46 = vector.shape_cast %45 : vector<1x8x1xf32> to vector<8x1xf32>
    %cst_50 = arith.constant 0.000000e+00 : f32
    %47 = vector.broadcast %cst_50 : f32 to vector<8x1xf32>
    %48 = arith.cmpf one, %46, %47 : vector<8x1xf32>
    %c0_51 = arith.constant 0 : index
    %c0_52 = arith.constant 0 : index
    %49 = vector.load %arg15[%c0_51, %c0_52] : memref<8x8xf32, #tpu.memory_space<vmem>>, vector<8x8xf32>
    %cst_53 = arith.constant 0.000000e+00 : f32
    %50 = vector.broadcast %cst_53 : f32 to vector<8x8xf32>
    %51 = arith.cmpf one, %49, %50 : vector<8x8xf32>
    %52 = vector.broadcast %48 : vector<8x1xi1> to vector<8x8xi1>
    %53 = arith.ori %52, %51 : vector<8x8xi1>
    %c0_54 = arith.constant 0 : index
    %c0_55 = arith.constant 0 : index
    %c0_56 = arith.constant 0 : index
    %54 = vector.load %arg16[%c0_54, %c0_55, %c0_56] : memref<1x8x8xf32, #tpu.memory_space<vmem>>, vector<1x8x8xf32>
    %55 = vector.shape_cast %54 : vector<1x8x8xf32> to vector<8x8xf32>
    %cst_57 = arith.constant 0.000000e+00 : f32
    %56 = vector.broadcast %cst_57 : f32 to vector<8x8xf32>
    %57 = arith.cmpf one, %55, %56 : vector<8x8xf32>
    %58 = arith.ori %53, %57 : vector<8x8xi1>
    %cst_58 = arith.constant -4.2949673E+9 : f32
    %59 = vector.broadcast %cst_58 : f32 to vector<8x8xf32>
    %60 = arith.select %58, %59, %44 : vector<8x8xi1>, vector<8x8xf32>
    %cst_59 = arith.constant dense<0xFF800000> : vector<8xf32>
    %61 = vector.multi_reduction <maximumf>, %60, %cst_59 [1] : vector<8x8xf32> to vector<8xf32>
    %62 = vector.shape_cast %61 : vector<8xf32> to vector<8x1xf32>
    %63 = vector.broadcast %62 : vector<8x1xf32> to vector<8x8xf32>
    %64 = arith.subf %60, %63 : vector<8x8xf32>
    %65 = math.exp %64 : vector<8x8xf32>
    %cst_60 = arith.constant dense<0.000000e+00> : vector<8xf32>
    %66 = vector.multi_reduction <add>, %65, %cst_60 [1] : vector<8x8xf32> to vector<8xf32>
    %67 = vector.shape_cast %66 : vector<8xf32> to vector<8x1xf32>
    %68 = vector.broadcast %67 : vector<8x1xf32> to vector<8x8xf32>
    %69 = arith.divf %65, %68 : vector<8x8xf32>
    %cst_61 = arith.constant dense<0.000000e+00> : vector<8x16xf32>
    %70 = tpu.matmul %69, %24, %cst_61 {dimension_numbers = #tpu.dot_dimension_numbers<[1], [0], [0], [1], [0, 0, 1, 1], [], []>, precision = #tpu.contract_precision<fp32>} : vector<8x8xf32>, vector<8x16xf32>, vector<8x16xf32> -> vector<8x16xf32>
    %cst_62 = arith.constant dense<0.000000e+00> : vector<8x16xf32>
    %71 = tpu.matmul %69, %28, %cst_62 {dimension_numbers = #tpu.dot_dimension_numbers<[1], [0], [0], [1], [0, 0, 1, 1], [], []>, precision = #tpu.contract_precision<fp32>} : vector<8x8xf32>, vector<8x16xf32>, vector<8x16xf32> -> vector<8x16xf32>
    %72 = arith.addf %70, %71 : vector<8x16xf32>
    %73 = vector.shape_cast %69 : vector<8x8xf32> to vector<8x8x1xf32>
    %74 = vector.broadcast %73 : vector<8x8x1xf32> to vector<8x8x16xf32>
    %75 = arith.mulf %74, %32 : vector<8x8x16xf32>
    %cst_63 = arith.constant dense<0.000000e+00> : vector<8x16xf32>
    %76 = vector.multi_reduction <add>, %75, %cst_63 [1] : vector<8x8x16xf32> to vector<8x16xf32>
    %77 = arith.addf %72, %76 : vector<8x16xf32>
    %c0_64 = arith.constant 0 : index
    %c0_65 = arith.constant 0 : index
    %c0_66 = arith.constant 0 : index
    %c0_67 = arith.constant 0 : index
    %78 = vector.load %arg17[%c0_64, %c0_65, %c0_66, %c0_67] : memref<1x1x8x16xf32, #tpu.memory_space<vmem>>, vector<1x1x8x16xf32>
    %79 = vector.shape_cast %78 : vector<1x1x8x16xf32> to vector<8x16xf32>
    %80 = vector.shape_cast %77 : vector<8x16xf32> to vector<1x1x8x16xf32>
    tpu.vector_store %arg17[%c0_64, %c0_65, %c0_66, %c0_67], %80 {strides = array<i32>} : memref<1x1x8x16xf32, #tpu.memory_space<vmem>>, vector<1x1x8x16xf32>,
    return
  }
  func.func @transform_0(%arg0: i32, %arg1: i32) -> (i32, i32, i32) {
    %c0_i32 = arith.constant 0 : i32
    %c0_i32_0 = arith.constant 0 : i32
    %c0_i32_1 = arith.constant 0 : i32
    return %arg1, %c0_i32, %c0_i32_0 : i32, i32, i32
  }
  func.func @transform_1(%arg0: i32, %arg1: i32) -> (i32, i32, i32) {
    %c0_i32 = arith.constant 0 : i32
    %c0_i32_0 = arith.constant 0 : i32
    %c0_i32_1 = arith.constant 0 : i32
    return %arg1, %c0_i32, %c0_i32_0 : i32, i32, i32
  }
  func.func @transform_2(%arg0: i32, %arg1: i32) -> (i32, i32, i32) {
    %c0_i32 = arith.constant 0 : i32
    %c0_i32_0 = arith.constant 0 : i32
    %c0_i32_1 = arith.constant 0 : i32
    return %arg0, %c0_i32, %c0_i32_0 : i32, i32, i32
  }
  func.func @transform_3(%arg0: i32, %arg1: i32) -> (i32, i32, i32) {
    %c0_i32 = arith.constant 0 : i32
    %c0_i32_0 = arith.constant 0 : i32
    %c0_i32_1 = arith.constant 0 : i32
    return %arg0, %c0_i32, %c0_i32_0 : i32, i32, i32
  }
  func.func @transform_4(%arg0: i32, %arg1: i32) -> (i32, i32, i32) {
    %c0_i32 = arith.constant 0 : i32
    %c0_i32_0 = arith.constant 0 : i32
    %c0_i32_1 = arith.constant 0 : i32
    return %arg0, %c0_i32, %c0_i32_0 : i32, i32, i32
  }
  func.func @transform_5(%arg0: i32, %arg1: i32) -> (i32, i32, i32) {
    %c0_i32 = arith.constant 0 : i32
    %c0_i32_0 = arith.constant 0 : i32
    %c0_i32_1 = arith.constant 0 : i32
    return %arg0, %c0_i32, %c0_i32_0 : i32, i32, i32
  }
  func.func @transform_6(%arg0: i32, %arg1: i32) -> (i32, i32, i32) {
    %c0_i32 = arith.constant 0 : i32
    %c0_i32_0 = arith.constant 0 : i32
    %c0_i32_1 = arith.constant 0 : i32
    return %arg0, %c0_i32, %c0_i32_0 : i32, i32, i32
  }
  func.func @transform_7(%arg0: i32, %arg1: i32) -> (i32, i32, i32) {
    %c0_i32 = arith.constant 0 : i32
    %c0_i32_0 = arith.constant 0 : i32
    %c0_i32_1 = arith.constant 0 : i32
    return %arg0, %c0_i32, %c0_i32_0 : i32, i32, i32
  }
  func.func @transform_8(%arg0: i32, %arg1: i32) -> (i32, i32, i32, i32) {
    %c0_i32 = arith.constant 0 : i32
    %c0_i32_0 = arith.constant 0 : i32
    %c0_i32_1 = arith.constant 0 : i32
    return %arg0, %arg1, %c0_i32, %c0_i32_0 : i32, i32, i32, i32
  }
  func.func @transform_9(%arg0: i32, %arg1: i32) -> (i32, i32, i32, i32) {
    %c0_i32 = arith.constant 0 : i32
    %c0_i32_0 = arith.constant 0 : i32
    %c0_i32_1 = arith.constant 0 : i32
    return %arg0, %arg1, %c0_i32, %c0_i32_0 : i32, i32, i32, i32
  }
  func.func @transform_10(%arg0: i32, %arg1: i32) -> (i32, i32, i32, i32, i32) {
    %c0_i32 = arith.constant 0 : i32
    %c0_i32_0 = arith.constant 0 : i32
    %c0_i32_1 = arith.constant 0 : i32
    %c0_i32_2 = arith.constant 0 : i32
    return %arg0, %arg1, %c0_i32, %c0_i32_0, %c0_i32_1 : i32, i32, i32, i32, i32
  }
  func.func @transform_11(%arg0: i32, %arg1: i32) -> (i32, i32, i32, i32, i32) {
    %c0_i32 = arith.constant 0 : i32
    %c0_i32_0 = arith.constant 0 : i32
    %c0_i32_1 = arith.constant 0 : i32
    %c0_i32_2 = arith.constant 0 : i32
    return %arg0, %arg1, %c0_i32, %c0_i32_0, %c0_i32_1 : i32, i32, i32, i32, i32
  }
  func.func @transform_12(%arg0: i32, %arg1: i32) -> (i32, i32, i32) {
    %c0_i32 = arith.constant 0 : i32
    %c0_i32_0 = arith.constant 0 : i32
    %c0_i32_1 = arith.constant 0 : i32
    return %arg1, %c0_i32, %c0_i32_0 : i32, i32, i32
  }
  func.func @transform_13(%arg0: i32, %arg1: i32) -> (i32, i32) {
    %c0_i32 = arith.constant 0 : i32
    %c0_i32_0 = arith.constant 0 : i32
    %c0_i32_1 = arith.constant 0 : i32
    return %c0_i32, %c0_i32_0 : i32, i32
  }
  func.func @transform_14(%arg0: i32, %arg1: i32) -> (i32, i32, i32) {
    %c0_i32 = arith.constant 0 : i32
    %c0_i32_0 = arith.constant 0 : i32
    %c0_i32_1 = arith.constant 0 : i32
    return %arg1, %c0_i32, %c0_i32_0 : i32, i32, i32
  }
  func.func @transform_15(%arg0: i32, %arg1: i32) -> (i32, i32, i32, i32) {
    %c0_i32 = arith.constant 0 : i32
    %c0_i32_0 = arith.constant 0 : i32
    %c0_i32_1 = arith.constant 0 : i32
    return %arg0, %arg1, %c0_i32, %c0_i32_0 : i32, i32, i32, i32
  }
}

</mosaic_0001>

<bundles_post_ra>
// kernel: tpu_custom_call.1
= control target key start
LH: loop header
LB: loop body
LE: loop exit
PB: predicated region body
PF: predicated region fallthrough
CT: control target
= control target key end

     0   :  { %s7000_s0 = inlined_call_operand.vmem [shape: f32[2,8,32], index: 0, kind: input, shape index: {}]   ;;  %s7001_s1 = inlined_call_operand.hbm [shape: f32[2,8,32], index: 1, kind: input, shape index: {}]   ;;  %s7002_s2 = inlined_call_operand.vmem [shape: f32[2,32,16], index: 2, kind: input, shape index: {}]   ;;  %s7003_s3 = inlined_call_operand.vmem [shape: f32[2,1,16], index: 3, kind: input, shape index: {}]   ;;  %s7004_s4 = inlined_call_operand.vmem [shape: f32[2,32,16], index: 4, kind: input, shape index: {}]   ;;  %s7005_s5 = inlined_call_operand.hbm [shape: f32[2,1,16], index: 5, kind: input, shape index: {}]   ;;  %s7006_s6 = inlined_call_operand.vmem [shape: f32[2,32,16], index: 6, kind: input, shape index: {}]   ;;  %s7007_s7 = inlined_call_operand.hbm [shape: f32[2,1,16], index: 7, kind: input, shape index: {}]   ;;  %s7008_s8 = inlined_call_operand.vmem [shape: f32[2,2,8,16], index: 8, kind: input, shape index: {}]   ;;  %s7009_s9 = inlined_call_operand.vmem [shape: f32[2,2,8,16], index: 9, kind: input, shape index: {}]   ;;  %s7010_s10 = inlined_call_operand.vmem [shape: f32[2,2,8,8,16], index: 10, kind: input, shape index: {}]   ;;  %s7011_s11 = inlined_call_operand.hbm [shape: f32[2,2,8,8,16], index: 11, kind: input, shape index: {}]   ;;  %s7012_s12 = inlined_call_operand.vmem [shape: f32[2,8,1], index: 12, kind: input, shape index: {}]   ;;  %s7013_s13 = inlined_call_operand.hbm [shape: f32[8,8], index: 13, kind: input, shape index: {}]   ;;  %s7014_s14 = inlined_call_operand.vmem [shape: f32[2,8,8], index: 14, kind: input, shape index: {}]   ;;  %s7015_s15 = inlined_call_operand.hbm [shape: f32[2,2,8,16], index: 15, kind: output, shape index: {}]  }
   0x1   :  { %7050 = sst [smem:[#allocation32_spill]] %s7000_s0 }
   0x2   :  { %7051 = sst [smem:[#allocation33_spill]] %s7001_s1 }
   0x3   :  { %7052 = sst [smem:[#allocation34_spill]] %s7002_s2 }
   0x4   :  { %7053 = sst [smem:[#allocation35_spill]] %s7003_s3 }
   0x5   :  { %7054 = sst [smem:[#allocation36_spill]] %s7004_s4 }
   0x6   :  { %7055 = sst [smem:[#allocation37_spill]] %s7005_s5 }
   0x7   :  { %7056 = sst [smem:[#allocation38_spill]] %s7006_s6 }
   0x8   :  { %7057 = sst [smem:[#allocation39_spill]] %s7007_s7 }
   0x9   :  { %7058 = sst [smem:[#allocation40_spill]] %s7008_s8 }
   0xa   :  { %7059 = sst [smem:[#allocation41_spill]] %s7009_s9 }
   0xb   :  { %7060 = sst [smem:[#allocation42_spill]] %s7010_s10 }
   0xc   :  { %7061 = sst [smem:[#allocation43_spill]] %s7011_s11 }
   0xd   :  { %7062 = sst [smem:[#allocation44_spill]] %s7012_s12 }
   0xe   :  { %7063 = sst [smem:[#allocation45_spill]] %s7013_s13 }
   0xf   :  { %7064 = sst [smem:[#allocation46_spill]] %s7014_s14 }
  0x10   :  { %7065 = sst [smem:[#allocation47_spill]] %s7015_s15 }
  0x11   :  { %20 = vsyncpa [#allocation3], 0 }
  0x12   :  { %22 = vsyncpa [#allocation3 + $0x1], 0 }
  0x13   :  { %23 = vsyncpa [#allocation6], 0 }
  0x14   :  { %25 = vsyncpa [#allocation6 + $0x1], 0 }
  0x15   :  { %26 = vsyncpa [#allocation9], 0 }
  0x16   :  { %28 = vsyncpa [#allocation9 + $0x1], 0 }
  0x17   :  { %29 = vsyncpa [#allocation4], 0 }
  0x18   :  { %31 = vsyncpa [#allocation4 + $0x1], 0  ;;  %s6038_s18 = smov 0   ;;  %s6040_s19 = smov 0  }
  0x19   :  { %s6042_s20 = smov 0   ;;  %s6044_s21 = smov 0  }
  0x1a   :  { %s6046_s22 = smov 0   ;;  %s6048_s23 = smov 0  }
  0x1b   :  { %s6050_s24 = smov 0   ;;  %s6052_s25 = smov 0  }
  0x1c   :  { %s6054_s26 = smov 0   ;;  %s6056_s27 = smov 0  }
  0x1d   :  { %s6058_s28 = smov 0   ;;  %s6060_s29 = smov 0  }
  0x1e   :  { %s6062_s30 = smov 0   ;;  %s6064_s16 = smov 0  }
  0x1f LB: > { %7066 = sst [smem:[#allocation17_spill]] %s5891_s18  ;;  %s6109_s17 = sadd.s32 4294967295, %s5943_s16   ;;  %s5943_s16 = sphi %s6064_s16, %s37_s16   ;;  %s5939_s30 = sphi %s6062_s30, %s7149_s30   ;;  %s5935_s29 = sphi %s6060_s29, %s7158_s29   ;;  %s5931_s28 = sphi %s6058_s28, %s7147_s28   ;;  %s5927_s27 = sphi %s6056_s27, %s7157_s27   ;;  %s5923_s26 = sphi %s6054_s26, %s7156_s26   ;;  %s5919_s25 = sphi %s6052_s25, %s7155_s25   ;;  %s5915_s24 = sphi %s6050_s24, %s7146_s24   ;;  %s5911_s23 = sphi %s6048_s23, %s7154_s23   ;;  %s5907_s22 = sphi %s6046_s22, %s7153_s22   ;;  %s5903_s21 = sphi %s6044_s21, %s7144_s21   ;;  %s5899_s20 = sphi %s6042_s20, %s7152_s20   ;;  %s5895_s19 = sphi %s6040_s19, %s7151_s19   ;;  %s5891_s18 = sphi %s6038_s18, %s7143_s18  }
  0x20   : > { %7067 = sst [smem:[#allocation18_spill]] %s5895_s19  ;;  %s4832_s15 = sadd.s32 4294967294, %s5943_s16  }
  0x21   : > { %7068 = sst [smem:[#allocation19_spill]] %s5907_s22  ;;  %p7021_p0 = scmp.eq.s32.totalorder %s6109_s17, 0 }
  0x22   : > { %7069 = sst [smem:[#allocation20_spill]] %s5919_s25  ;;  %p7022_p1 = scmp.ne.s32.totalorder %s5899_s20, %s5895_s19 }
  0x23   : > { %7070 = sst [smem:[#allocation21_spill]] %s5927_s27  ;;  %p363_p2 = scmp.ne.s32.totalorder %s5895_s19, %s5891_s18 }
  0x24   : > { %7071 = sst [smem:[#allocation22_spill]] %s5931_s28  ;;  %p462_p3 = scmp.eq.s32.totalorder %s6109_s17, 3 }
  0x25   : > { %7072 = sst [smem:[#allocation23_spill]] %s5939_s30  ;;  %p468_p4 = scmp.eq.s32.totalorder %s4832_s15, 3 }
  0x26   : > { %7073 = sst [smem:[#allocation24_spill]] %s6109_s17  ;;  %p4833_p5 = scmp.ge.s32.totalorder %s5943_s16, 1 }
  0x27   : > { %p6121_p6 = por %p363_p2, %p7021_p0  ;;  %p6128_p7 = por %p462_p3, %p7022_p1 }
  0x28   : > { %p6132_p8 = por %p468_p4, %p363_p2  ;;  %p475_p9 = scmp.lt.s32.totalorder %s5943_s16, 5 }
  0x29   : > { %s7074_s9 = scalar_select %p6121_p6, 1, 0 }
  0x2a   : > { %s7076_s14 = scalar_select %p6128_p7, 1, 0 }
  0x2b   : > { %7075 = sst [smem:[#allocation25_spill]] %s7074_s9  ;;  %p6137_p10 = pnand %p4833_p5, %p475_p9 }
  0x2c   : > { %7077 = sst [smem:[#allocation26_spill]] %s7076_s14  ;;  %s5945_s15 = smov [#allocation10]  }
  0x2d   : > { %s7078_s6 = scalar_select %p6132_p8, 1, 0 }
  0x2e   : > { %s7080_s18 = scalar_select %p6137_p10, 1, 0 }
  0x2f   : > { %7079 = sst [smem:[#allocation27_spill]] %s7078_s6  ;;  %s488_s12 = sshll.u32 %s5945_s15, 4  ;;  %s489_s12 = int_to_ptr.vmem [resolvable:$true] %s488_s12 }
  0x30   : > { %p5487_p11 = pneg %p6137_p10  ;;  %s7082_s13 = sld [smem:[#allocation45_spill]] }
  0x32   : > { %p6145_p12 = pnand %p5487_p11, %p7021_p0 }
  0x34   : > { %p5639_p2 = pneg %p6145_p12 }
  0x36   : > { %s5637_s6 = scalar_lea.hbm %s7082_s13, 128 }
  0x37   : > { %p5638_p13 = scmp.ne.s32.totalorder %s7082_s13, %s5637_s6  ;;  %p5644_p5 = scmp.lt.u32.totalorder %s5637_s6, %s7082_s13 }
  0x39   : > { %p5640_p3 = pnand %p5639_p2, %p5638_p13 }
  0x3b   : > { %p5641_p4 = pneg %p5640_p3 }
  0x3d   : > { %p5646_p9 = pnand %p5644_p5, %p5641_p4 }
  0x3f   : > { %5649 = shalt.err (!%p5646_p9)
}
  0x40   : > { %s5650_s2 = scalar_lea.vmem %s489_s12, 128  ;;  %p5658_p8 = scmp.lt.s32.totalorder %s489_s12, %s489_s12 }
  0x41   : > { %p5651_p11 = scmp.ne.s32.totalorder %s489_s12, %s5650_s2  ;;  %p5659_p7 = scmp.lt.s32.totalorder %s5650_s2, %s5650_s2 }
  0x43   : > { %p5653_p0 = pnand %p5651_p11, %p5639_p2  ;;  %p5660_p6 = por %p5659_p7, %p5658_p8 }
  0x45   : > { %p5654_p1 = pneg %p5653_p0 }
  0x47   : > { %p5661_p10 = pnand %p5660_p6, %p5654_p1 }
  0x49   : > { %5664 = shalt.err (!%p5661_p10)
}
  0x4a   : > { %5490 = dma.hbm_to_vmem [thread:$0]  (!%p6145_p12), %s7082_s13, 128, %s489_s12, [#allocation9]  }
  0x4b   : > { %p7031_p0 = scmp.eq.s32.totalorder %s5943_s16, 0  ;;  %p193_p1 = scmp.ne.s32.totalorder %s5911_s23, %s5907_s22 }
  0x4c   : > { %p199_p6 = scmp.ne.s32.totalorder %s5907_s22, %s5903_s21  ;;  %p7083_p7 = scmp.ne.s32.totalorder %s5899_s20, %s5895_s19 }
  0x4d   : > { %p7029_p10 = scmp.lt.s32.totalorder %s5943_s16, 4  ;;  %p195_p13 = por %p193_p1, %p7031_p0 }
  0x4e   : > { %p359_p8 = por %p7083_p7, %p7031_p0  ;;  %p7084_p2 = scmp.eq.s32.totalorder %s6109_s17, 0 }
  0x4f   : > { %s7030_s8 = sand.u32 1, %s5943_s16   ;;  %s7026_s10 = sand.u32 1, %s5911_s23  }
  0x50   : > { %p6182_p3 = por %p199_p6, %p7084_p2  ;;  %s6189_s12 = sshll.u32 %s5939_s30, 4 }
  0x51   : > { %s549_s14 = scalar_lea.vmem [#allocation5], %s7026_s10  ;;  %s7087_s5 = sld [smem:[#allocation37_spill]] }
  0x52   : > { %s7085_s6 = scalar_select %p6182_p3, 1, 0 }
  0x53   : > { %s556_s15 = sshll.u32 %s549_s14, 4  ;;  %p6203_p12 = pnand %p7029_p10, %p195_p13  ;;  %s6199_s15 = int_to_ptr.vmem [resolvable:$true] %s556_s15 }
  0x54   : > { %7086 = sst [smem:[#allocation28_spill]] %s7085_s6  ;;  %p6209_p4 = pnand %p7029_p10, %p359_p8 }
  0x55   : > { %s6215_s21 = scalar_lea.sflag [#allocation6], %s7030_s8  ;;  %p7047_p9 = pneg %p6203_p12 }
  0x56   : > { %s7089_s14 = scalar_select %p6209_p4, 1, 0 }
  0x57   : > { %s6197_s3 = scalar_lea.hbm %s7087_s5, %s6189_s12  ;;  %s5670_s13 = scalar_lea.hbm %s7087_s5, 32 }
  0x58   : > { %s5665_s0 = scalar_lea.hbm %s6197_s3, 16  ;;  %p5671_p6 = scmp.lt.u32.totalorder %s6197_s3, %s7087_s5 }
  0x59   : > { %p5666_p5 = scmp.ne.s32.totalorder %s6197_s3, %s5665_s0  ;;  %p5672_p7 = scmp.lt.u32.totalorder %s5670_s13, %s5665_s0 }
  0x5a   : > { %p5674_p13 = scmp.lt.u32.totalorder %s5665_s0, %s6197_s3 }
  0x5b   : > { %p5668_p11 = pnand %p7047_p9, %p5666_p5  ;;  %p5673_p8 = por %p5672_p7, %p5671_p6 }
  0x5d   : > { %p5669_p1 = pneg %p5668_p11  ;;  %p5675_p2 = por %p5674_p13, %p5673_p8 }
  0x5f   : > { %p5676_p10 = pnand %p5675_p2, %p5669_p1 }
  0x61   : > { %5679 = shalt.err (!%p5676_p10)
}
  0x62   : > { %s5680_s8 = scalar_lea.vmem %s6199_s15, 16  ;;  %s5946_s2 = smov [#allocation5]  }
  0x63   : > { %p5681_p5 = scmp.ne.s32.totalorder %s6199_s15, %s5680_s8  ;;  %s5685_s10 = sshll.u32 %s5946_s2, 4  ;;  %s5686_s10 = int_to_ptr.vmem [resolvable:$false] %s5685_s10 }
  0x64   : > { %s5687_s27 = scalar_lea.vmem %s5686_s10, 32  ;;  %p5688_p3 = scmp.lt.s32.totalorder %s6199_s15, %s5686_s10 }
  0x65   : > { %p5683_p11 = pnand %p5681_p5, %p7047_p9  ;;  %p5689_p6 = scmp.lt.s32.totalorder %s5687_s27, %s5680_s8 }
  0x67   : > { %p5684_p0 = pneg %p5683_p11  ;;  %p5690_p7 = por %p5689_p6, %p5688_p3 }
  0x69   : > { %p5691_p8 = pnand %p5690_p7, %p5684_p0 }
  0x6b   : > { %5694 = shalt.err (!%p5691_p8)
}
  0x6c   : > { %5497 = dma.hbm_to_vmem [thread:$0]  (!%p6203_p12), %s6197_s3, 16, %s6199_s15, %s6215_s21  }
  0x6d   : > { %s46_s13 = sadd.s32 1, %s5935_s29  ;;  %s82_s28 = sadd.s32 1, %s5923_s26 }
  0x6e   : > { %p47_p0 = scmp.ge.s32.totalorder %s46_s13, 2  ;;  %p89_p10 = scmp.ne.s32.totalorder %s5923_s26, %s5919_s25 }
  0x6f   : > { %p95_p3 = scmp.ne.s32.totalorder %s5919_s25, %s5915_s24  ;;  %s350_s8 = sadd.s32 1, %s5899_s20 }
  0x70   : > { %s7160_s13 = smov (%p47_p0, %s46_s13), 0  ;;  %s7091_s0 = sadd.s32 1, %s5939_s30 }
  0x71   : > { %7090 = sst [smem:[#allocation29_spill]] %s7160_s13  ;;  %s7162_s0 = smov (!%p47_p0, %s7091_s0), %s5939_s30 }
  0x72   : > { %s79_s2 = ssub.s32 %s5935_s29, %s7160_s13  ;;  %p7092_p1 = scmp.eq.s32.totalorder %s5943_s16, 0 }
  0x73   : > { %p51_p2 = scmp.ge.s32.totalorder %s7162_s0, 2  ;;  %p80_p5 = scmp.eq.s32.totalorder %s79_s2, 0 }
  0x74   : > { %p6259_p13 = por %p7092_p1, %p89_p10  ;;  %p7094_p11 = scmp.eq.s32.totalorder %s6109_s17, 0 }
  0x75   : > { %s506_s3 = sand.u32 1, %s5923_s26   ;;  %s7164_s0 = smov (%p51_p2, %s7162_s0), 0 }
  0x76   : > { %p6265_p6 = por %p7094_p11, %p95_p3  ;;  %7097 = sst [smem:[#allocation31_spill]] %s7164_s0 }
  0x77   : > { %s6273_s10 = scalar_select %p80_p5, %s5923_s26, %s82_s28  }
  0x78   : > { %s7095_s24 = scalar_select %p6265_p6, 1, 0 }
  0x79   : > { %s183_s27 = ssub.s32 %s5939_s30, %s7164_s0  ;;  %s4836_s13 = sshll.u32 %s506_s3, 3 }
  0x7a   : > { %7096 = sst [smem:[#allocation30_spill]] %s7095_s24  ;;  %p184_p7 = scmp.eq.s32.totalorder %s183_s27, 0 }
  0x7b   : > { %s347_s5 = sor.u32 %s183_s27, %s79_s2  ;;  %s7098_s9 = sadd.s32 1, %s5911_s23 }
  0x7c   : > { %p348_p8 = scmp.eq.s32.totalorder %s347_s5, 0  ;;  %s4837_s22 = sshll.u32 %s5935_s29, 7 }
  0x7d   : > { %s6280_s19 = scalar_select %p184_p7, %s5911_s23, %s7098_s9  }
  0x7e   : > { %s6283_s6 = scalar_select %p348_p8, %s5899_s20, %s350_s8  }
  0x7f   : > { %s7099_s1 = sld [smem:[#allocation33_spill]]  ;;  %s510_s28 = scalar_lea.vmem [#allocation2], %s4836_s13 }
  0x80   : > { %s517_s0 = sshll.u32 %s510_s28, 4  ;;  %p7100_p0 = scmp.lt.s32.totalorder %s5943_s16, 4  ;;  %s6291_s0 = int_to_ptr.vmem [resolvable:$true] %s517_s0 }
  0x81   : > { %s7102_s7 = sld [smem:[#allocation39_spill]]  ;;  %s7103_s2 = sand.u32 1, %s5911_s23  }
  0x82   : > { %p6297_p10 = pnand %p7100_p0, %p6259_p13  ;;  %s6310_s13 = scalar_lea.vmem [#allocation7], %s7103_s2 }
  0x83   : > { %s581_s24 = sshll.u32 %s6310_s13, 4  ;;  %s507_s15 = scalar_lea.sflag [#allocation3], %s506_s3  ;;  %s582_s24 = int_to_ptr.vmem [resolvable:$true] %s581_s24 }
  0x84   : > { %p5697_p1 = pneg %p6297_p10 }
  0x85   : > { %s6289_s25 = scalar_lea.hbm %s7099_s1, %s4837_s22  ;;  %s5700_s17 = scalar_lea.hbm %s7099_s1, 256 }
  0x86   : > { %s5695_s27 = scalar_lea.hbm %s6289_s25, 128  ;;  %p5701_p5 = scmp.lt.u32.totalorder %s6289_s25, %s7099_s1 }
  0x87   : > { %s6306_s8 = scalar_lea.hbm %s7102_s7, %s6189_s12  ;;  %p5696_p3 = scmp.ne.s32.totalorder %s6289_s25, %s5695_s27 }
  0x88   : > { %p5702_p11 = scmp.lt.u32.totalorder %s5700_s17, %s5695_s27  ;;  %p5704_p8 = scmp.lt.u32.totalorder %s5695_s27, %s6289_s25 }
  0x89   : > { %p5698_p13 = pnand %p5697_p1, %p5696_p3 }
  0x8a   : > { %p5703_p7 = por %p5702_p11, %p5701_p5 }
  0x8b   : > { %p5699_p2 = pneg %p5698_p13 }
  0x8c   : > { %p5705_p0 = por %p5704_p8, %p5703_p7 }
  0x8e   : > { %p5706_p9 = pnand %p5705_p0, %p5699_p2 }
  0x90   : > { %5709 = shalt.err (!%p5706_p9)
}
  0x91   : > { %s5710_s3 = scalar_lea.vmem %s6291_s0, 128  ;;  %s5947_s9 = smov [#allocation2]  }
  0x92   : > { %p5711_p3 = scmp.ne.s32.totalorder %s6291_s0, %s5710_s3  ;;  %s5715_s2 = sshll.u32 %s5947_s9, 4  ;;  %s5716_s2 = int_to_ptr.vmem [resolvable:$false] %s5715_s2 }
  0x93   : > { %s5717_s30 = scalar_lea.vmem %s5716_s2, 256  ;;  %p5718_p4 = scmp.lt.s32.totalorder %s6291_s0, %s5716_s2 }
  0x94   : > { %p5713_p13 = pnand %p5711_p3, %p5697_p1  ;;  %p5719_p5 = scmp.lt.s32.totalorder %s5717_s30, %s5710_s3 }
  0x96   : > { %p5714_p6 = pneg %p5713_p13  ;;  %p5720_p11 = por %p5719_p5, %p5718_p4 }
  0x98   : > { %p5721_p7 = pnand %p5720_p11, %p5714_p6 }
  0x9a   : > { %5724 = shalt.err (!%p5721_p7)
}
  0x9b   : > { %5494 = dma.hbm_to_vmem [thread:$0]  (!%p6297_p10), %s6289_s25, 128, %s6291_s0, %s507_s15  }
  0x9c   : > { %s624_s27 = sand.u32 1, %s5899_s20   ;;  %s5725_s28 = scalar_lea.hbm %s6306_s8, 16 }
  0x9d   : > { %p5726_p9 = scmp.ne.s32.totalorder %s6306_s8, %s5725_s28  ;;  %p7104_p4 = pneg %p6203_p12 }
  0x9e   : > { %s5730_s22 = scalar_lea.hbm %s7102_s7, 32  ;;  %p5731_p2 = scmp.lt.u32.totalorder %s6306_s8, %s7102_s7 }
  0x9f   : > { %p5728_p6 = pnand %p5726_p9, %p7104_p4  ;;  %p5732_p8 = scmp.lt.u32.totalorder %s5730_s22, %s5725_s28 }
  0xa0   : > { %p5734_p10 = scmp.lt.u32.totalorder %s5725_s28, %s6306_s8 }
  0xa1   : > { %p5729_p1 = pneg %p5728_p6  ;;  %p5733_p0 = por %p5732_p8, %p5731_p2 }
  0xa3   : > { %p5735_p3 = por %p5734_p10, %p5733_p0 }
  0xa5   : > { %p5736_p13 = pnand %p5735_p3, %p5729_p1 }
  0xa7   : > { %5739 = shalt.err (!%p5736_p13)
}
  0xa8   : > { %s5740_s25 = scalar_lea.vmem %s582_s24, 16  ;;  %p7105_p11 = pmov %p7104_p4 }
  0xa9   : > { %p5741_p5 = scmp.ne.s32.totalorder %s582_s24, %s5740_s25  ;;  %s5948_s0 = smov [#allocation7]  }
  0xaa   : > { %s5745_s13 = sshll.u32 %s5948_s0, 4  ;;  %s5746_s13 = int_to_ptr.vmem [resolvable:$false] %s5745_s13 }
  0xab   : > { %p5743_p7 = pnand %p5741_p5, %p7105_p11  ;;  %s5747_s15 = scalar_lea.vmem %s5746_s13, 32 }
  0xac   : > { %p5748_p4 = scmp.lt.s32.totalorder %s582_s24, %s5746_s13  ;;  %p5749_p6 = scmp.lt.s32.totalorder %s5747_s15, %s5740_s25 }
  0xad   : > { %p5744_p9 = pneg %p5743_p7 }
  0xae   : > { %p5750_p2 = por %p5749_p6, %p5748_p4 }
  0xb0   : > { %p5751_p8 = pnand %p5750_p2, %p5744_p9 }
  0xb2   : > { %5754 = shalt.err (!%p5751_p8)
}
  0xb3   : > { %5500 = dma.hbm_to_vmem [thread:$0]  (!%p6203_p12), %s6306_s8, 16, %s582_s24, %s6215_s21  }
  0xb4   : > { %s4840_s2 = sshll.u32 %s624_s27, 6  ;;  %s7106_s30 = sshll.u32 %s5935_s29, 3 }
  0xb5   : > { %s632_s28 = sadd.s32 %s7106_s30, %s6189_s12  ;;  %s7107_s11 = sld [smem:[#allocation43_spill]] }
  0xb6   : > { %s4843_s5 = sshll.u32 %s632_s28, 7  ;;  %s626_s4 = scalar_lea.vmem [#allocation8], %s4840_s2 }
  0xb7   : > { %s635_s9 = sshll.u32 %s626_s4, 4  ;;  %s7108_s25 = sand.u32 1, %s5943_s16   ;;  %s6369_s9 = int_to_ptr.vmem [resolvable:$true] %s635_s9 }
  0xb8   : > { %s6373_s0 = scalar_lea.sflag [#allocation9], %s7108_s25  ;;  %p7109_p1 = scmp.ne.s32.totalorder %s7089_s14, 0 }
  0xba   : > { %p5757_p0 = pneg %p7109_p1 }
  0xbb   : > { %s6367_s3 = scalar_lea.hbm %s7107_s11, %s4843_s5  ;;  %s5760_s24 = scalar_lea.hbm %s7107_s11, 4096 }
  0xbc   : > { %s5755_s21 = scalar_lea.hbm %s6367_s3, 1024  ;;  %p5761_p13 = scmp.lt.u32.totalorder %s6367_s3, %s7107_s11 }
  0xbd   : > { %p5756_p12 = scmp.ne.s32.totalorder %s6367_s3, %s5755_s21  ;;  %p5762_p5 = scmp.lt.u32.totalorder %s5760_s24, %s5755_s21 }
  0xbe   : > { %p5764_p7 = scmp.lt.u32.totalorder %s5755_s21, %s6367_s3 }
  0xbf   : > { %p5758_p10 = pnand %p5757_p0, %p5756_p12  ;;  %p5763_p11 = por %p5762_p5, %p5761_p13 }
  0xc1   : > { %p5759_p3 = pneg %p5758_p10  ;;  %p5765_p9 = por %p5764_p7, %p5763_p11 }
  0xc3   : > { %p5766_p4 = pnand %p5765_p9, %p5759_p3 }
  0xc5   : > { %5769 = shalt.err (!%p5766_p4)
}
  0xc6   : > { %s5770_s15 = scalar_lea.vmem %s6369_s9, 1024  ;;  %s5949_s2 = smov [#allocation8]  }
  0xc7   : > { %p5771_p6 = scmp.ne.s32.totalorder %s6369_s9, %s5770_s15  ;;  %s5775_s30 = sshll.u32 %s5949_s2, 4  ;;  %s5776_s30 = int_to_ptr.vmem [resolvable:$false] %s5775_s30 }
  0xc8   : > { %s5777_s28 = scalar_lea.vmem %s5776_s30, 2048  ;;  %p5778_p12 = scmp.lt.s32.totalorder %s6369_s9, %s5776_s30 }
  0xc9   : > { %p5773_p2 = pnand %p5771_p6, %p5757_p0  ;;  %p5779_p10 = scmp.lt.s32.totalorder %s5777_s28, %s5770_s15 }
  0xcb   : > { %p5774_p8 = pneg %p5773_p2  ;;  %p5780_p13 = por %p5779_p10, %p5778_p12 }
  0xcd   : > { %p5781_p5 = pnand %p5780_p13, %p5774_p8 }
  0xcf   : > { %5784 = shalt.err (!%p5781_p5)
}
  0xd0   : > { %s5950_s5 = smov 128   ;;  %s5951_s17 = smov 8  }
  0xd1   : > { %5503 = dma.hbm_to_vmem [thread:$0]  (!%p7109_p1), %s6367_s3, 1024, %s6369_s9, %s6373_s0, %s5950_s5, %s5950_s5, %s5951_s17  }
  0xd2   : > { %p7110_p0 = scmp.ne.s32.totalorder %s7080_s18, 0 }
  0xd3   : > { %s7111_s22 = sld [smem:[#allocation20_spill]] (!%p7110_p0)  ;;  %s7112_s4 = sld [smem:[#allocation30_spill]] (!%p7110_p0) }
  0xd4   : > { %661 = sbr.rel (%p7110_p0) target bundleno = 1377 (0x561), region = 80 }
  0xd9   : > { %s663_s25 = sand.u32 (!%p7110_p0), 1, %s7111_s22   ;;  %p7113_p3 = scmp.ne.s32.totalorder (!%p7110_p0), %s7112_s4, 0 }
  0xda   : > { %s6404_s21 = sshll.u32 (!%p7110_p0), %s663_s25, 3  ;;  %s664_s12 = scalar_lea.sflag (!%p7110_p0), [#allocation3], %s663_s25 }
  0xdb   : > { %5870 = dma.done.wait (%p7113_p3), %s664_s12, 128  }
  0xdc   : > { %5872 = vsyncadd (%p7113_p3), %s664_s12, 4294967168  ;;  %s7114_s24 = sld [smem:[#allocation24_spill]]  ;;  %s7116_s14 = sld [smem:[#allocation28_spill]] }
  0xdd   : > { %s7115_s27 = sld [smem:[#allocation19_spill]] }
  0xe2   : > { %s672_s3 = sand.u32 1, %s7114_s24   ;;  %p7117_p1 = scmp.ne.s32.totalorder %s7116_s14, 0 }
  0xe3   : > { %s674_s9 = sand.u32 1, %s7115_s27   ;;  %s673_s18 = scalar_lea.sflag [#allocation6], %s672_s3 }
  0xe4   : > { %s6413_s0 = scalar_lea.vmem [#allocation5], %s674_s9 }
  0xe5   : > { %5874 = dma.done.wait (%p7117_p1), %s673_s18, 32  }
  0xe6   : > { %5876 = vsyncadd (%p7117_p1), %s673_s18, 4294967264  ;;  %s7118_s13 = sld [smem:[#allocation18_spill]]  ;;  %s7119_s15 = sld [smem:[#allocation25_spill]] }
  0xe7   : > { %s6423_s28 = scalar_lea.vmem [#allocation7], %s674_s9  ;;  %s689_s5 = scalar_lea.sflag [#allocation9], %s672_s3 }
  0xec   : > { %s6420_s2 = sand.u32 1, %s7118_s13   ;;  %p7120_p11 = scmp.ne.s32.totalorder %s7119_s15, 0 }
  0xed   : > { %s4846_s30 = sshll.u32 %s6420_s2, 6 }
  0xee   : > { %s6425_s17 = scalar_lea.vmem [#allocation8], %s4846_s30 }
  0xef   : > { %5878 = dma.done.wait (%p7120_p11), %s689_s5, 1024  }
  0xf0   : > { %5880 = vsyncadd (%p7120_p11), %s689_s5, 4294966272  ;;  %p7121_p7 = scmp.eq.s32.totalorder %s7114_s24, 0 }
  0xf2   : > { %5882 = dma.done.wait (%p7121_p7), [#allocation9], 128   ;;  %p7122_p9 = pmov %p7121_p7 }
  0xf3   : > { %s7123_s22 = sld [smem:[#allocation22_spill]]  ;;  %s7124_s4 = sld [smem:[#allocation21_spill]]  ;;  %v5952_v0 = vmov 0.0|0.0   ;;  %vm5953_vm0 = vmmov 0   ;;  %v5954_v1 = vmov 0.0   ;;  %vm879_vm1 = vcmask 261120  }
  0xf4   : > { %5884 = vsyncadd (%p7122_p9), [#allocation9], 4294967168  ;;  %5332 = vmatprep.subr.bf16.mxu0 %v5952_v0  ;;  %5368 = vmatprep.subr.bf16.mxu1 %v5952_v0  ;;  %s7125_s3 = sld [smem:[#allocation34_spill]]  ;;  %s7126_s15 = sld [smem:[#allocation36_spill]]  ;;  %vm2381_vm2 = vcmask 130048   ;;  %vm3446_vm4 = vcmask 1041409  }
  0xf5   : > { %5022 = vmatprep.mubr.msk.f32.mxu0 %vm5953_vm0, %v5954_v1  ;;  %5088 = vmatprep.mubr.msk.f32.mxu1 %vm5953_vm0, %v5954_v1  ;;  %s7127_s7 = sld [smem:[#allocation32_spill]]  ;;  %s7128_s1 = scalar_lea.vmem [#allocation2], %s6404_s21  ;;  %vm3448_vm5 = vcmask 1042434   ;;  %vm3450_vm6 = vcmask 1043459   ;;  %vm3452_vm7 = vcmask 1044484   ;;  %vm3454_vm8 = vcmask 1045509  }
  0xf6   : > { %v867_v21 = vld [vmem:[%s7128_s1] sm:$0xff]  ;;  %s7129_s14 = sld [smem:[#allocation40_spill]]  ;;  %s7130_s13 = sld [smem:[#allocation35_spill]]  ;;  %vm3456_vm9 = vcmask 1046534   ;;  %vm3458_vm12 = vcmask 1047559  }
  0xf7   : > { %v1380_v31 = vsel %vm879_vm1, %v867_v21, 0  ;;  %v5955_v21 = vmov 0   ;;  %s7131_s8 = sld [smem:[#allocation42_spill]]  ;;  %s4523_s18 = scalar_lea.sflag [#allocation4], %s6420_s2 }
  0xf8   : > { %v6503_v37 = vand.u32 4294901760, %v1380_v31  ;;  %5632 = vset.pattern.permute.xlu0 %v5955_v21 }
  0xf9   : > { %p815_p4 = scmp.lt.s32.totalorder %s7123_s22, 1  ;;  %p811_p6 = scmp.lt.s32.totalorder %s7124_s4, 1 }
  0xfa   : > { %v6517_v42 = vsub.f32 %v1380_v31, %v6503_v37 }
  0xfb   : > { %s6440_s25 = scalar_select %p815_p4, %s7123_s22, 1 }
  0xfc   : > { %s6447_s12 = scalar_select %p811_p6, %s7124_s4, 1  ;;  %v6529_v50 = vand.u32 4294901760, %v6517_v42 }
  0xfd   : > { %s6450_s24 = sshll.u32 %s6440_s25, 5 }
  0xfe   : > { %s819_s9 = scalar_lea.vmem %s7125_s3, %s6450_s24  ;;  %s827_s30 = scalar_lea.vmem %s7126_s15, %s6450_s24  ;;  %v1454_v58 = vsub.f32 %v6517_v42, %v6529_v50 }
  0xff   : > { %s6461_s5 = sshll.u32 %s6447_s12, 3  ;;  %v868_v2 = vld [vmem:[%s819_s9] sm:$0xff]  ;;  %v869_v3 = vld [vmem:[%s819_s9 + $0x8] sm:$0xff]  ;;  %v870_v9 = vld [vmem:[%s819_s9 + $0x10] sm:$0xff]  ;;  %s822_s15 = scalar_lea.vmem %s7130_s13, %s6440_s25 }
 0x100   : > { %v1368_v4 = vld [vmem:[%s827_s30] sm:$0xff]  ;;  %s814_s11 = scalar_lea.vmem %s7127_s7, %s6461_s5  ;;  %v884_v5 = vand.u32 4294901760, %v868_v2  ;;  %v887_v6 = vand.u32 4294901760, %v869_v3  ;;  %v1369_v7 = vld [vmem:[%s827_s30 + $0x8] sm:$0xff]  ;;  %v871_v10 = vld [vmem:[%s819_s9 + $0x18] sm:$0xff]  ;;  %v890_v12 = vand.u32 4294901760, %v870_v9 }
 0x101   : > { %v1383_v8 = vand.u32 4294901760, %v1368_v4  ;;  %v1386_v11 = vand.u32 4294901760, %v1369_v7  ;;  %v893_v13 = vand.u32 4294901760, %v871_v10  ;;  %v1370_v14 = vld [vmem:[%s827_s30 + $0x10] sm:$0xff]  ;;  %v1371_v15 = vld [vmem:[%s827_s30 + $0x18] sm:$0xff]  ;;  %v866_v16 = vld [vmem:[%s814_s11] sm:$0xff] }
 0x102   : > { %v6467_v17 = vpack.c.bf16 %v887_v6, %v884_v5  ;;  %v6469_v18 = vsub.f32 %v868_v2, %v884_v5  ;;  %v6471_v19 = vsub.f32 %v869_v3, %v887_v6  ;;  %v6483_v25 = vsub.f32 %v870_v9, %v890_v12  ;;  %s4856_s7 = sshll.u32 %s6440_s25, 1  ;;  %s7133_s13 = sld [smem:[#allocation38_spill]] }
 0x103   : > { %v6473_v20 = vsub.f32 %v1368_v4, %v1383_v8  ;;  %v6477_v22 = vpack.c.bf16 %v1386_v11, %v1383_v8  ;;  %v6479_v23 = vsub.f32 %v1369_v7, %v1386_v11  ;;  %v6481_v24 = vpack.c.bf16 %v893_v13, %v890_v12  ;;  %s6642_s11 = sadd.s32 %s4856_s7, %s6447_s12  ;;  %s4861_s12 = sshll.u32 %s6440_s25, 4 }
 0x104   : > { %5334 = vmatpush3.bf16.msra.mxu0 %v6467_v17  ;;  %v6486_v26 = vsub.f32 %v871_v10, %v893_v13  ;;  %v1389_v27 = vand.u32 4294901760, %v1370_v14  ;;  %v1392_v28 = vand.u32 4294901760, %v1371_v15  ;;  %v881_v29 = vsel %vm879_vm1, %v866_v16, 0  ;;  %s4857_s21 = sshll.u32 %s6642_s11, 3  ;;  %s855_s30 = sadd.s32 %s4861_s12, %s6461_s5 }
 0x105   : > { %5370 = vmatpush3.bf16.msra.mxu1 %v6477_v22  ;;  %5335 = vmatprep.subr.bf16.mxu0 %v5952_v0  ;;  %v6491_v30 = vand.u32 4294901760, %v881_v29  ;;  %v965_v32 = vand.u32 4294901760, %v6469_v18  ;;  %v972_v33 = vand.u32 4294901760, %v6471_v19  ;;  %v1464_v41 = vand.u32 4294901760, %v6473_v20  ;;  %s840_s3 = scalar_lea.vmem %s7129_s14, %s4857_s21  ;;  %s4862_s1 = sshll.u32 %s855_s30, 3 }
 0x106   : > { %5371 = vmatprep.subr.bf16.mxu1 %v5952_v0  ;;  %v6497_v34 = vpack.c.bf16 %v1392_v28, %v1389_v27  ;;  %v6499_v35 = vsub.f32 %v1370_v14, %v1389_v27  ;;  %v6501_v36 = vsub.f32 %v1371_v15, %v1392_v28  ;;  %v1471_v43 = vand.u32 4294901760, %v6479_v23  ;;  %v4865_v28 = vld [vmem:[%s822_s15] ss:$0 sm:$0xff]  ;;  %s6674_s27 = scalar_lea.vmem %s7131_s8, %s4862_s1  ;;  %s7134_s1 = sld [smem:[#allocation46_spill]] }
 0x107   : > { %v6506_v38 = vsub.f32 %v881_v29, %v6491_v30  ;;  %v966_v39 = vsub.f32 %v6469_v18, %v965_v32  ;;  %v973_v40 = vsub.f32 %v6471_v19, %v972_v33  ;;  %v979_v44 = vand.u32 4294901760, %v6483_v25  ;;  %s7135_s8 = sld [smem:[#allocation41_spill]] }
 0x108   : > { %5337 = vmatpush3.bf16.msra.mxu0 %v6481_v24  ;;  %v986_v45 = vand.u32 4294901760, %v6486_v26  ;;  %v1465_v49 = vsub.f32 %v6473_v20, %v1464_v41  ;;  %v1472_v51 = vsub.f32 %v6479_v23, %v1471_v43  ;;  %v1478_v57 = vand.u32 4294901760, %v6499_v35  ;;  %s832_s15 = scalar_lea.vmem %s7133_s13, %s6450_s24 }
 0x109   : > { %5373 = vmatpush3.bf16.msra.mxu1 %v6497_v34  ;;  %v954_v46 = vand.u32 4294901760, %v6506_v38  ;;  %5338 = vmatprep.subr.bf16.mxu0 %v5952_v0  ;;  %v967_v47 = vand.u32 4294901760, %v966_v39  ;;  %v974_v48 = vand.u32 4294901760, %v973_v40  ;;  %v980_v52 = vsub.f32 %v6483_v25, %v979_v44 }
 0x10a   : > { %5374 = vmatprep.subr.bf16.mxu1 %v5952_v0  ;;  %v987_v53 = vsub.f32 %v6486_v26, %v986_v45  ;;  %v1466_v56 = vand.u32 4294901760, %v1465_v49  ;;  %v1473_v59 = vand.u32 4294901760, %v1472_v51  ;;  %v1479_v63 = vsub.f32 %v6499_v35, %v1478_v57 }
 0x10b   : > { %v955_v54 = vsub.f32 %v6506_v38, %v954_v46  ;;  %v5339_v55 = vpack.c.bf16 %v974_v48, %v967_v47  ;;  %v981_v60 = vand.u32 4294901760, %v980_v52  ;;  %v1485_v2 = vand.u32 4294901760, %v6501_v36  ;;  %v2365_v48 = vld [vmem:[%s6674_s27] sm:$0xff] }
 0x10c   : > { %v988_v61 = vand.u32 4294901760, %v987_v53  ;;  %v6551_v3 = vand.u32 4294901760, %v1454_v58  ;;  %v5375_v4 = vpack.c.bf16 %v1473_v59, %v1466_v56  ;;  %v1480_v5 = vand.u32 4294901760, %v1479_v63  ;;  %v2367_v53 = vld [vmem:[%s6674_s27 + $0x10] sm:$0xff]  ;;  %s865_s25 = scalar_lea.vmem %s7134_s1, %s6461_s5 }
 0x10d   : > { %v956_v62 = vand.u32 4294901760, %v955_v54  ;;  %v1486_v6 = vsub.f32 %v6501_v36, %v1485_v2  ;;  %v5345_v10 = vpack.c.bf16 %v6471_v19, %v6469_v18  ;;  %v5381_v11 = vpack.c.bf16 %v6479_v23, %v6473_v20 }
 0x10e   : > { %5089 = vmatmul.mubr.f32.vlgmr.msra.gmra.mrb[0].mxu1 %v6551_v3  ;;  %v5342_v7 = vpack.c.bf16 %v988_v61, %v981_v60  ;;  %v5348_v12 = vpack.c.bf16 %v6486_v26, %v6483_v25  ;;  %v5384_v13 = vpack.c.bf16 %v6501_v36, %v6499_v35  ;;  %v5357_v14 = vpack.c.bf16 %v972_v33, %v965_v32 }
 0x10f   : > { %5023 = vmatmul.mubr.f32.vlgmr.msra.gmra.mrb[0].mxu0 %v956_v62  ;;  %5376 = vmatpush3.bf16.msra.mxu1 %v5375_v4  ;;  %v1487_v8 = vand.u32 4294901760, %v1486_v6  ;;  %v5393_v15 = vpack.c.bf16 %v1471_v43, %v1464_v41  ;;  %v5360_v16 = vpack.c.bf16 %v986_v45, %v979_v44  ;;  %v5396_v18 = vpack.c.bf16 %v1485_v2, %v1478_v57 }
 0x110   : > { %5340 = vmatpush3.bf16.msra.mxu0 %v5339_v55  ;;  %5377 = vmatprep.subr.bf16.mxu1 %v5952_v0  ;;  %v2366_v55 = vld [vmem:[%s6674_s27 + $0x8] sm:$0xff]  ;;  %vm3477_vm1 = vcmask 64512  }
 0x111   : > { %5341 = vmatprep.subr.bf16.mxu0 %v5952_v0  ;;  %5033 = vmatprep.mubr.msk.f32.mxu0 %vm5953_vm0, %v5954_v1  ;;  %v5378_v9 = vpack.c.bf16 %v1487_v8, %v1480_v5  ;;  %v4866_v5 = vld [vmem:[%s6413_s0] ss:$0 sm:$0xff] }
 0x112   : > { %5099 = vmatprep.mubr.msk.f32.mxu1 %vm5953_vm0, %v5954_v1 }
 0x113   : > { %5379 = vmatpush3.bf16.msra.mxu1 %v5378_v9  ;;  %v2368_v9 = vld [vmem:[%s6674_s27 + $0x18] sm:$0xff] }
 0x114   : > { %5343 = vmatpush3.bf16.msra.mxu0 %v5342_v7  ;;  %5380 = vmatprep.subr.bf16.mxu1 %v5952_v0 }
 0x115   : > { %5344 = vmatprep.subr.bf16.mxu0 %v5952_v0 }
 0x116   : > { %5100 = vmatmul.mubr.f32.vlgmr.msra.gmra.mrb[0].mxu1 %v6503_v37 }
 0x117   : > { %5034 = vmatmul.mubr.f32.vlgmr.msra.gmra.mrb[0].mxu0 %v6491_v30  ;;  %5382 = vmatpush3.bf16.msra.mxu1 %v5381_v11 }
 0x118   : > { %5346 = vmatpush3.bf16.msra.mxu0 %v5345_v10  ;;  %5383 = vmatprep.subr.bf16.mxu1 %v5952_v0 }
 0x119   : > { %5347 = vmatprep.subr.bf16.mxu0 %v5952_v0  ;;  %5044 = vmatprep.mubr.msk.f32.mxu0 %vm5953_vm0, %v5954_v1 }
 0x11a   : > { %5110 = vmatprep.mubr.msk.f32.mxu1 %vm5953_vm0, %v5954_v1 }
 0x11b   : > { %5385 = vmatpush3.bf16.msra.mxu1 %v5384_v13  ;;  %v2369_v13 = vld [vmem:[%s6674_s27 + $0x20] sm:$0xff] }
 0x11c   : > { %5349 = vmatpush3.bf16.msra.mxu0 %v5348_v12  ;;  %5386 = vmatprep.subr.bf16.mxu1 %v5952_v0 }
 0x11d   : > { %5350 = vmatprep.subr.bf16.mxu0 %v5952_v0 }
 0x11e   : > { %5111 = vmatmul.mubr.f32.vlgmr.msra.gmra.mrb[0].mxu1 %v6517_v42 }
 0x11f   : > { %5045 = vmatmul.mubr.f32.vlgmr.msra.gmra.mrb[0].mxu0 %v6506_v38  ;;  %5388 = vmatpush3.bf16.msra.mxu1 %v6477_v22 }
 0x120   : > { %5352 = vmatpush3.bf16.msra.mxu0 %v6467_v17  ;;  %5389 = vmatprep.subr.bf16.mxu1 %v5952_v0 }
 0x121   : > { %5353 = vmatprep.subr.bf16.mxu0 %v5952_v0  ;;  %5055 = vmatprep.mubr.msk.f32.mxu0 %vm5953_vm0, %v5954_v1 }
 0x122   : > { %5121 = vmatprep.mubr.msk.f32.mxu1 %vm5953_vm0, %v5954_v1 }
 0x123   : > { %5391 = vmatpush3.bf16.msra.mxu1 %v6497_v34 }
 0x124   : > { %5355 = vmatpush3.bf16.msra.mxu0 %v6481_v24  ;;  %5392 = vmatprep.subr.bf16.mxu1 %v5952_v0 }
 0x125   : > { %5356 = vmatprep.subr.bf16.mxu0 %v5952_v0 }
 0x126   : > { %5122 = vmatmul.mubr.f32.vlgmr.msra.gmra.mrb[0].mxu1 %v6529_v50 }
 0x127   : > { %5056 = vmatmul.mubr.f32.vlgmr.msra.gmra.mrb[0].mxu0 %v954_v46  ;;  %5394 = vmatpush3.bf16.msra.mxu1 %v5393_v15 }
 0x128   : > { %5358 = vmatpush3.bf16.msra.mxu0 %v5357_v14  ;;  %5395 = vmatprep.subr.bf16.mxu1 %v5952_v0 }
 0x129   : > { %5359 = vmatprep.subr.bf16.mxu0 %v5952_v0  ;;  %5066 = vmatprep.mubr.msk.f32.mxu0 %vm5953_vm0, %v5954_v1 }
 0x12a   : > { %5132 = vmatprep.mubr.msk.f32.mxu1 %vm5953_vm0, %v5954_v1 }
 0x12b   : > { %5397 = vmatpush3.bf16.msra.mxu1 %v5396_v18 }
 0x12c   : > { %5361 = vmatpush3.bf16.msra.mxu0 %v5360_v16  ;;  %5398 = vmatprep.subr.bf16.mxu1 %v5952_v0 }
 0x12d   : > { %5362 = vmatprep.subr.bf16.mxu0 %v5952_v0 }
 0x12e   : > { %5133 = vmatmul.mubr.f32.vlgmr.msra.gmra.mrb[0].mxu1 %v6503_v37 }
 0x12f   : > { %5067 = vmatmul.mubr.f32.vlgmr.msra.gmra.mrb[0].mxu0 %v6491_v30  ;;  %5400 = vmatpush3.bf16.msra.mxu1 %v6477_v22  ;;  %v5956_v22 = vmov 1966171168  }
 0x130   : > { %5364 = vmatpush3.bf16.msra.mxu0 %v6467_v17  ;;  %5401 = vmatprep.subr.bf16.mxu1 %v5952_v0  ;;  %v2363_v17 = vld [vmem:[%s840_s3] sm:$0xff]  ;;  %v3285_v23 = vunpack.c.l.s4 %v5956_v22  ;;  %s7132_s3 = sld [smem:[#allocation44_spill]] }
 0x131   : > { %5365 = vmatprep.subr.bf16.mxu0 %v5952_v0  ;;  %5077 = vmatprep.mubr.msk.f32.mxu0 %vm5953_vm0, %v5954_v1  ;;  %v2386_v19 = vsel %vm2381_vm2, %v2363_v17, 0 }
 0x132   : > { %5143 = vmatprep.mubr.msk.f32.mxu1 %vm5953_vm0, %v5954_v1  ;;  %v6651_v20 = vand.u32 4294901760, %v2386_v19  ;;  %v3286_v25 = vunpack.c.0.s8 %v3285_v23 }
 0x133   : > { %5403 = vmatpush3.bf16.msra.mxu1 %v6497_v34 }
 0x134   : > { %5367 = vmatpush3.bf16.msra.mxu0 %v6481_v24  ;;  %5212 = vmatprep.subr.mxu1 %v5954_v1  ;;  %v3287_v24 = vlaneseq  ;;  %v6665_v27 = vsub.f32 %v2386_v19, %v6651_v20  ;;  %v2370_v19 = vld [vmem:[%s6674_s27 + $0x28] sm:$0xff] }
 0x135   : > { %5404 = vmatprep.subr.bf16.mxu0 %v5952_v0 }
 0x136   : > { %5144 = vmatmul.mubr.f32.vlgmr.msra.gmra.mrb[0].mxu1 %v6503_v37  ;;  %v6662_v26 = vshrl.u32 %v3287_v24, 7  ;;  %v2467_v34 = vand.u32 4294901760, %v6665_v27  ;;  %s861_s12 = scalar_lea.vmem %s7132_s3, %s6461_s5 }
 0x137   : > { %5078 = vmatmul.mubr.f32.vlgmr.msra.gmra.mrb[0].mxu0 %v6491_v30  ;;  %5214 = vmatprep.mubr.msk.f32.mxu1 %vm5953_vm0, %v5954_v1 }
 0x138   : > { %5154 = vmatprep.mubr.msk.f32.mxu0 %vm5953_vm0, %v5954_v1  ;;  %v3289_v29 = vsub.s32 %v3286_v25, %v6662_v26  ;;  %v6677_v40 = vsub.s32 0, %v6662_v26  ;;  %v2468_v46 = vsub.f32 %v6665_v27, %v2467_v34 }
 0x13a   : > { %v2469_v60 = vand.u32 4294901760, %v2468_v46 }
 0x13c   : > { %5213 = vmatpush3.xpose.msra.mxu1 %v6651_v20 }
 0x13d   : > { %5217 = vmatprep.subr.mxu1 %v5954_v1 }
 0x209   : > { %v1863_v32 = vpop.f32.mrb[0].mxu1 }
 0x20a   : > { %v1364_v30 = vpop.f32.mrb[0].mxu0  ;;  %v5145_v35 = vpop.f32.mrb[1].mxu1  ;;  %v5441_v18 = vadd.f32 %v4866_v5, %v1863_v32 }
 0x20b   : > { %v5440_v31 = vadd.f32 %v4865_v28, %v1364_v30  ;;  %v5079_v33 = vpop.f32.mrb[1].mxu0  ;;  %v2371_v28 = vld [vmem:[%s6674_s27 + $0x30] sm:$0xff] }
 0x20c   : > { %v2835_v32 = vsel %vm2381_vm2, %v5441_v18, 0  ;;  %v2372_v33 = vld [vmem:[%s6674_s27 + $0x38] sm:$0xff]  ;;  %s848_s27 = scalar_lea.vmem %s7135_s8, %s4857_s21  ;;  %s7136_s21 = sld [smem:[#allocation26_spill]] }
 0x20d   : > { %v2383_v36 = vsel %vm2381_vm2, %v5440_v31, 0  ;;  %v3283_v38 = vcombine.high %v5440_v31, %v5440_v31  ;;  %v3290_v39 = vrot.slane %v5440_v31, %v3289_v29 }
 0x20e   : > { %v6679_v41 = vand.u32 4294901760, %v2383_v36 }
 0x20f   : > { %v3297_v43 = vrot.slane %v3283_v38, %v3289_v29  ;;  %v3298_v44 = vcombine.high %v3290_v39, %v3290_v39  ;;  %v3306_v45 = vrot.slane %v3290_v39, %v3289_v29  ;;  %v2838_v38 = vand.u32 4294901760, %v2835_v32 }
 0x210   : > { %v6685_v47 = vsub.f32 %v2383_v36, %v6679_v41 }
 0x211   : > { %v3335_v49 = vrot.slane %v3306_v45, %v6677_v40  ;;  %v3328_v51 = vcombine.high %v3306_v45, %v3306_v45  ;;  %v3320_v52 = vrot.slane %v3298_v44, %v3289_v29  ;;  %v3313_v56 = vrot.slane %v3297_v43, %v3289_v29 }
 0x212   : > { %v6691_v54 = vand.u32 4294901760, %v6685_v47  ;;  %v3299_v57 = vcombine.high %v3297_v43, %v3297_v43  ;;  %v2915_v45 = vsub.f32 %v2835_v32, %v2838_v38  ;;  %p7138_p8 = scmp.ne.s32.totalorder %s7136_s21, 0 }
 0x213   : > { %v3372_v58 = vmul.f32 %v3335_v49, %v2365_v48  ;;  %v3343_v59 = vrot.slane %v3328_v51, %v6677_v40  ;;  %v3339_v61 = vrot.slane %v3320_v52, %v6677_v40  ;;  %v3330_v63 = vcombine.high %v3320_v52, %v3320_v52  ;;  %v1869_v51 = vld [vmem:[%s832_s15 + $0x10] sm:$0xff] }
 0x214   : > { %v2457_v62 = vsub.f32 %v6685_v47, %v6691_v54  ;;  %v3351_v2 = vrot.slane %v3313_v56, %v6677_v40  ;;  %v3327_v4 = vrot.slane %v3299_v57, %v3289_v29  ;;  %v3329_v10 = vcombine.high %v3313_v56, %v3313_v56 }
 0x215   : > { %v3380_v6 = vsel %vm2381_vm2, %v3372_v58, 0.0  ;;  %v3374_v7 = vmul.f32 %v3343_v59, %v2367_v53  ;;  %v3373_v8 = vmul.f32 %v3339_v61, %v2366_v55  ;;  %v3347_v12 = vrot.slane %v3330_v63, %v6677_v40 }
 0x216   : > { %3381 = vadd.xlane.f32.xlu0 %v3380_v6  ;;  %v2458_v11 = vand.u32 4294901760, %v2457_v62  ;;  %v3355_v15 = vrot.slane %v3327_v4, %v6677_v40  ;;  %v3331_v16 = vcombine.high %v3327_v4, %v3327_v4  ;;  %v3376_v23 = vmul.f32 %v3351_v2, %v2369_v13 }
 0x217   : > { %v3386_v14 = vsel %vm2381_vm2, %v3374_v7, 0.0  ;;  %v3375_v17 = vmul.f32 %v3347_v12, %v2368_v9  ;;  %v3383_v22 = vsel %vm2381_vm2, %v3373_v8, 0.0  ;;  %v3359_v25 = vrot.slane %v3329_v10, %v6677_v40 }
 0x218   : > { %3387 = vadd.xlane.f32.xlu1 %v3386_v14  ;;  %5215 = vmatmul.mubr.f32.vlgmr.msra.gmra.mrb[2].mxu1 %v2458_v11  ;;  %v3377_v30 = vmul.f32 %v3355_v15, %v2370_v19  ;;  %v3363_v31 = vrot.slane %v3331_v16, %v6677_v40  ;;  %v3392_v35 = vsel %vm2381_vm2, %v3376_v23, 0.0  ;;  %v2916_v48 = vand.u32 4294901760, %v2915_v45 }
 0x219   : > { %5218 = vmatpush3.xpose.msra.mxu1 %v2469_v60  ;;  %5219 = vmatprep.mubr.msk.f32.mxu1 %vm5953_vm0, %v5954_v1  ;;  %v3389_v29 = vsel %vm2381_vm2, %v3375_v17, 0.0  ;;  %v3378_v36 = vmul.f32 %v3359_v25, %v2371_v28  ;;  %v1885_v55 = vand.u32 4294901760, %v1869_v51 }
 0x21a   : > { %3384 = vadd.xlane.f32.xlu0 %v3383_v22  ;;  %5222 = vmatprep.subr.mxu1 %v5954_v1  ;;  %v3395_v39 = vsel %vm2381_vm2, %v3377_v30, 0.0  ;;  %v3379_v43 = vmul.f32 %v3363_v31, %v2372_v33  ;;  %v2917_v49 = vsub.f32 %v2915_v45, %v2916_v48 }
 0x21b   : > { %v3398_v44 = vsel %vm2381_vm2, %v3378_v36, 0.0  ;;  %v1973_v60 = vsub.f32 %v1869_v51, %v1885_v55 }
 0x21c   : > { %3390 = vadd.xlane.f32.xlu1 %v3389_v29  ;;  %5220 = vmatmul.mubr.f32.vlgmr.msra.gmra.mrb[4].mxu1 %v6679_v41  ;;  %v3401_v46 = vsel %vm2381_vm2, %v3379_v43, 0.0 }
 0x21d   : > { %5223 = vmatpush3.xpose.msra.mxu1 %v6665_v27  ;;  %5224 = vmatprep.mubr.msk.f32.mxu1 %vm5953_vm0, %v5954_v1  ;;  %v2918_v27 = vand.u32 4294901760, %v2917_v49  ;;  %v1974_v2 = vand.u32 4294901760, %v1973_v60 }
 0x21e   : > { %3393 = vadd.xlane.f32.xlu0 %v3392_v35  ;;  %5227 = vmatprep.subr.mxu1 %v5954_v1 }
 0x21f   : > { %v1975_v7 = vsub.f32 %v1973_v60, %v1974_v2 }
 0x220   : > { %3396 = vadd.xlane.f32.xlu1 %v3395_v39  ;;  %5225 = vmatmul.mubr.f32.vlgmr.msra.gmra.mrb[6].mxu1 %v6685_v47 }
 0x221   : > { %5228 = vmatpush3.xpose.msra.mxu1 %v6651_v20  ;;  %5229 = vmatprep.mubr.msk.f32.mxu1 %vm5953_vm0, %v5954_v1 }
 0x222   : > { %3399 = vadd.xlane.f32.xlu0 %v3398_v44  ;;  %5232 = vmatprep.subr.mxu1 %v5954_v1 }
 0x224   : > { %3402 = vadd.xlane.f32.xlu1 %v3401_v46  ;;  %5230 = vmatmul.mubr.f32.vlgmr.msra.gmra.mrb[8].mxu1 %v6691_v54 }
 0x225   : > { %5233 = vmatpush3.xpose.msra.mxu1 %v2467_v34  ;;  %5234 = vmatprep.mubr.msk.f32.mxu1 %vm5953_vm0, %v5954_v1 }
 0x226   : > { %5237 = vmatprep.subr.mxu1 %v5954_v1 }
 0x228   : > { %5235 = vmatmul.mubr.f32.vlgmr.msra.gmra.mrb[10].mxu1 %v6679_v41 }
 0x229   : > { %5238 = vmatpush3.xpose.msra.mxu1 %v6651_v20  ;;  %5239 = vmatprep.mubr.msk.f32.mxu1 %vm5953_vm0, %v5954_v1  ;;  %v3463_v20 = vld [vmem:[%s861_s12] sm:$0xff]  ;;  %s7137_s12 = sld [smem:[#allocation47_spill]] }
 0x22a   : > { %5242 = vmatprep.subr.mxu1 %v5954_v1  ;;  %vm3464_vm3 = vcmp.ne.f32.partialorder %v3463_v20, 0.0 }
 0x22b   : > { %v3467_v34 = vsel %vm3464_vm3, 1, %v5955_v21  ;;  %v1867_v21 = vld [vmem:[%s832_s15] sm:$0xff] }
 0x22c   : > { %5240 = vmatmul.mubr.f32.vlgmr.msra.gmra.mrb[12].mxu1 %v6679_v41  ;;  %v1879_v52 = vand.u32 4294901760, %v1867_v21 }
 0x22d   : > { %5243 = vmatpush3.xpose.msra.mxu1 %v2838_v38  ;;  %5244 = vmatprep.mubr.msk.f32.mxu1 %vm5953_vm0, %v5954_v1 }
 0x22e   : > { %5247 = vmatprep.subr.mxu1 %v5954_v1  ;;  %v1959_v58 = vsub.f32 %v1867_v21, %v1879_v52 }
 0x230   : > { %5245 = vmatmul.mubr.f32.vlgmr.msra.gmra.mrb[14].mxu1 %v2458_v11  ;;  %v1960_v62 = vand.u32 4294901760, %v1959_v58  ;;  %v1976_v11 = vand.u32 4294901760, %v1975_v7 }
 0x231   : > { %5248 = vmatpush3.xpose.msra.mxu1 %v2918_v27  ;;  %5249 = vmatprep.mubr.msk.f32.mxu1 %vm5953_vm0, %v5954_v1 }
 0x232   : > { %5252 = vmatprep.subr.mxu1 %v5954_v1  ;;  %v1961_v5 = vsub.f32 %v1959_v58, %v1960_v62 }
 0x234   : > { %5250 = vmatmul.mubr.f32.vlgmr.msra.gmra.mrb[16].mxu1 %v6679_v41  ;;  %v1962_v9 = vand.u32 4294901760, %v1961_v5 }
 0x235   : > { %5253 = vmatpush3.xpose.msra.mxu1 %v2915_v45  ;;  %5254 = vmatprep.mubr.msk.f32.mxu1 %vm5953_vm0, %v5954_v1 }
 0x236   : > { %5257 = vmatprep.subr.mxu1 %v5954_v1 }
 0x238   : > { %5255 = vmatmul.mubr.f32.vlgmr.msra.gmra.mrb[18].mxu1 %v6685_v47  ;;  %3469 = vperm.xlu0 %5632, %v3467_v34   ;;  %v1868_v47 = vld [vmem:[%s832_s15 + $0x8] sm:$0xff] }
 0x239   : > { %5258 = vmatpush3.xpose.msra.mxu1 %v2838_v38  ;;  %5259 = vmatprep.mubr.msk.f32.mxu1 %vm5953_vm0, %v5954_v1  ;;  %v1882_v53 = vand.u32 4294901760, %v1868_v47 }
 0x23a   : > { %5262 = vmatprep.subr.mxu1 %v5954_v1 }
 0x23b   : > { %v5405_v57 = vpack.c.bf16 %v1882_v53, %v1879_v52  ;;  %v1966_v59 = vsub.f32 %v1868_v47, %v1882_v53 }
 0x23c   : > { %5260 = vmatmul.mubr.f32.vlgmr.msra.gmra.mrb[20].mxu1 %v6691_v54  ;;  %v1870_v54 = vld [vmem:[%s832_s15 + $0x18] sm:$0xff]  ;;  %s5957_s15 = smov [#allocation11]  }
 0x23d   : > { %5263 = vmatpush3.xpose.msra.mxu1 %v2916_v48  ;;  %5264 = vmatprep.mubr.msk.f32.mxu1 %vm5953_vm0, %v5954_v1  ;;  %v1888_v56 = vand.u32 4294901760, %v1870_v54  ;;  %v1967_v63 = vand.u32 4294901760, %v1966_v59  ;;  %v5417_v15 = vpack.c.bf16 %v1966_v59, %v1959_v58  ;;  %s5789_s24 = sshll.u32 %s5957_s15, 4  ;;  %s5790_s24 = int_to_ptr.vmem [resolvable:$false] %s5789_s24 }
 0x23e   : > { %5267 = vmatprep.subr.mxu1 %v5954_v1  ;;  %5406 = vmatpush3.bf16.msra.mxu0 %v5405_v57  ;;  %s5791_s30 = scalar_lea.vmem %s5790_s24, 256 }
 0x23f   : > { %v5408_v61 = vpack.c.bf16 %v1888_v56, %v1885_v55  ;;  %5407 = vmatprep.subr.bf16.mxu0 %v5952_v0  ;;  %v1968_v6 = vsub.f32 %v1966_v59, %v1967_v63 }
 0x240   : > { %5265 = vmatmul.mubr.f32.vlgmr.msra.gmra.mrb[22].mxu1 %v6679_v41 }
 0x241   : > { %5268 = vmatpush3.xpose.msra.mxu1 %v2838_v38  ;;  %5269 = vmatprep.mubr.msk.f32.mxu1 %vm5953_vm0, %v5954_v1  ;;  %v1969_v10 = vand.u32 4294901760, %v1968_v6 }
 0x242   : > { %5277 = vmatprep.subr.mxu1 %v5954_v1  ;;  %5409 = vmatpush3.bf16.msra.mxu0 %v5408_v61 }
 0x243   : > { %5410 = vmatprep.subr.bf16.mxu0 %v5952_v0  ;;  %v5411_v13 = vpack.c.bf16 %v1969_v10, %v1962_v9 }
 0x244   : > { %5270 = vmatmul.mubr.f32.vlgmr.msra.gmra.mrb[24].mxu1 %v6679_v41  ;;  %v1980_v41 = vsub.f32 %v1870_v54, %v1888_v56 }
 0x245   : > { %5279 = vmatprep.mubr.msk.f32.mxu1 %vm5953_vm0, %v5954_v1  ;;  %5155 = vmatmul.mubr.f32.vlgmr.msra.gmra.mrb[2].mxu0 %v6551_v3  ;;  %v5429_v3 = vpack.c.bf16 %v1967_v63, %v1960_v62 }
 0x246   : > { %v1981_v4 = vand.u32 4294901760, %v1980_v41  ;;  %5412 = vmatpush3.bf16.msra.mxu0 %v5411_v13  ;;  %5165 = vmatprep.mubr.msk.f32.mxu0 %vm5953_vm0, %v5954_v1  ;;  %v5420_v16 = vpack.c.bf16 %v1980_v41, %v1973_v60 }
 0x247   : > { %5413 = vmatprep.subr.bf16.mxu0 %v5952_v0 }
 0x248   : > { %v1982_v8 = vsub.f32 %v1980_v41, %v1981_v4  ;;  %v5432_v18 = vpack.c.bf16 %v1981_v4, %v1974_v2 }
 0x24a   : > { %v1983_v12 = vand.u32 4294901760, %v1982_v8  ;;  %v3465_v8 = vld [vmem:[#allocation10] sm:$0xff] }
 0x24b   : > { %vm3466_vm10 = vcmp.ne.f32.partialorder %v3465_v8, 0.0 }
 0x24c   : > { %v5414_v14 = vpack.c.bf16 %v1983_v12, %v1976_v11 }
 0x24e   : > { %5415 = vmatpush3.bf16.msra.mxu0 %v5414_v14 }
 0x24f   : > { %5416 = vmatprep.subr.bf16.mxu0 %v5952_v0 }
 0x251   : > { %5166 = vmatmul.mubr.f32.vlgmr.msra.gmra.mrb[2].mxu0 %v6503_v37 }
 0x252   : > { %5418 = vmatpush3.bf16.msra.mxu0 %v5417_v15  ;;  %5176 = vmatprep.mubr.msk.f32.mxu0 %vm5953_vm0, %v5954_v1  ;;  %v3473_v15 = vld [vmem:[%s865_s25] sm:$0xff] }
 0x253   : > { %5419 = vmatprep.subr.bf16.mxu0 %v5952_v0  ;;  %vm3474_vm14 = vcmp.ne.f32.partialorder %v3473_v15, 0.0 }
 0x256   : > { %5421 = vmatpush3.bf16.msra.mxu0 %v5420_v16 }
 0x257   : > { %5422 = vmatprep.subr.bf16.mxu0 %v5952_v0 }
 0x259   : > { %5177 = vmatmul.mubr.f32.vlgmr.msra.gmra.mrb[2].mxu0 %v6517_v42 }
 0x25a   : > { %5424 = vmatpush3.bf16.msra.mxu0 %v5405_v57  ;;  %5187 = vmatprep.mubr.msk.f32.mxu0 %vm5953_vm0, %v5954_v1 }
 0x25b   : > { %5425 = vmatprep.subr.bf16.mxu0 %v5952_v0 }
 0x25e   : > { %5427 = vmatpush3.bf16.msra.mxu0 %v5408_v61 }
 0x25f   : > { %5428 = vmatprep.subr.bf16.mxu0 %v5952_v0 }
 0x261   : > { %5188 = vmatmul.mubr.f32.vlgmr.msra.gmra.mrb[2].mxu0 %v6529_v50 }
 0x262   : > { %5430 = vmatpush3.bf16.msra.mxu0 %v5429_v3  ;;  %5198 = vmatprep.mubr.msk.f32.mxu0 %vm5953_vm0, %v5954_v1 }
 0x263   : > { %5431 = vmatprep.subr.bf16.mxu0 %v5952_v0 }
 0x266   : > { %5433 = vmatpush3.bf16.msra.mxu0 %v5432_v18 }
 0x267   : > { %5434 = vmatprep.subr.bf16.mxu0 %v5952_v0 }
 0x269   : > { %5199 = vmatmul.mubr.f32.vlgmr.msra.gmra.mrb[2].mxu0 %v6503_v37 }
 0x26a   : > { %5436 = vmatpush3.bf16.msra.mxu0 %v5405_v57  ;;  %5209 = vmatprep.mubr.msk.f32.mxu0 %vm5953_vm0, %v5954_v1 }
 0x26b   : > { %5437 = vmatprep.subr.bf16.mxu0 %v5952_v0 }
 0x26e   : > { %5439 = vmatpush3.bf16.msra.mxu0 %v5408_v61 }
 0x26f   : > { %5272 = vmatprep.subr.mxu0 %v5954_v1 }
 0x271   : > { %5210 = vmatmul.mubr.f32.vlgmr.msra.gmra.mrb[2].mxu0 %v6503_v37  ;;  %v3413_v37 = vand.u32 127, %v3287_v24 }
 0x272   : > { %5274 = vmatprep.mubr.msk.f32.mxu0 %vm5953_vm0, %v5954_v1 }
 0x273   : > { %v3416_v45 = vsub.s32 %v3413_v37, %v6662_v26 }
 0x2a3   : > { %v3382_v0 = vpop.xlane.xlu0 %3381 }
 0x2a4   : > { %v3417_v20 = vrot.slane %v3382_v0, %v3416_v45 }
 0x2a5   : > { %v3388_v36 = vpop.xlane.xlu1 %3387 }
 0x2a6   : > { %v3425_v51 = vrot.slane %v3388_v36, %v3416_v45 }
 0x2a7   : > { %v3385_v39 = vpop.xlane.xlu0 %3384 }
 0x2a8   : > { %v3421_v46 = vrot.slane %v3385_v39, %v3416_v45 }
 0x2a9   : > { %v3391_v34 = vpop.xlane.xlu1 %3390 }
 0x2aa   : > { %v3447_v21 = vsel %vm3446_vm4, %v3421_v46, %v3417_v20  ;;  %v3429_v54 = vrot.slane %v3391_v34, %v3416_v45 }
 0x2ab   : > { %v3394_v24 = vpop.xlane.xlu0 %3393  ;;  %v3449_v55 = vsel %vm3448_vm5, %v3425_v51, %v3447_v21  ;;  %v4393_v51 = vsub.s32 1, %v6662_v26 }
 0x2ac   : > { %v3433_v57 = vrot.slane %v3394_v24, %v3416_v45  ;;  %v3451_v41 = vsel %vm3450_vm6, %v3429_v54, %v3449_v55 }
 0x2ad   : > { %v3397_v58 = vpop.xlane.xlu1 %3396 }
 0x2ae   : > { %v3437_v62 = vrot.slane %v3397_v58, %v3416_v45  ;;  %v3453_v2 = vsel %vm3452_vm7, %v3433_v57, %v3451_v41 }
 0x2af   : > { %v3400_v61 = vpop.xlane.xlu0 %3399 }
 0x2b0   : > { %v3441_v6 = vrot.slane %v3400_v61, %v3416_v45  ;;  %v3455_v10 = vsel %vm3454_vm8, %v3437_v62, %v3453_v2  ;;  %v4414_v62 = vsub.s32 4, %v6662_v26  ;;  %v4421_v2 = vsub.s32 5, %v6662_v26 }
 0x2b1   : > { %v3403_v7 = vpop.xlane.xlu1 %3402 }
 0x2b2   : > { %v3445_v14 = vrot.slane %v3403_v7, %v3416_v45  ;;  %v3457_v16 = vsel %vm3456_vm9, %v3441_v6, %v3455_v10 }
 0x2b7   : > { %v3470_v9 = vpop.permute.xlu0 %3469 }
 0x2b8   : > { %vm3471_vm11 = vcmp.eq.s32.totalorder %v3470_v9, 1 }
 0x2b9   : > { %vm3472_vm13 = vmor %vm3471_vm11, %vm3466_vm10 }
 0x2ba   : > { %vm3475_vm15 = vmor %vm3472_vm13, %vm3474_vm14 }
 0x2eb   : > { %v2460_v42 = vpop.f32.mrb[2].mxu1 }
 0x2ec   : > { %v5216_v50 = vpop.f32.mrb[3].mxu1 }
 0x2ed   : > { %v3459_v50 = vsel %vm3458_vm12, %v3445_v14, %v3457_v16  ;;  %v2376_v14 = vld [vmem:[%s6425_s17 + $0x18] sm:$0xff] }
 0x2ef   : > { %v2536_v17 = vpop.f32.mrb[4].mxu1 }
 0x2f0   : > { %v2537_v19 = vadd.f32 %v2536_v17, %v2460_v42  ;;  %v5221_v22 = vpop.f32.mrb[5].mxu1 }
 0x2f3   : > { %v2610_v23 = vpop.f32.mrb[6].mxu1 }
 0x2f4   : > { %v2611_v25 = vadd.f32 %v2610_v23, %v2537_v19  ;;  %v5226_v28 = vpop.f32.mrb[7].mxu1 }
 0x2f7   : > { %v2684_v29 = vpop.f32.mrb[8].mxu1 }
 0x2f8   : > { %v2685_v30 = vadd.f32 %v2684_v29, %v2611_v25  ;;  %v5231_v31 = vpop.f32.mrb[9].mxu1 }
 0x2fb   : > { %v2758_v32 = vpop.f32.mrb[10].mxu1 }
 0x2fc   : > { %v2759_v33 = vadd.f32 %v2758_v32, %v2685_v30  ;;  %v5236_v35 = vpop.f32.mrb[11].mxu1 }
 0x2ff   : > { %v2830_v38 = vpop.f32.mrb[12].mxu1 }
 0x300   : > { %v2831_v43 = vadd.f32 %v2830_v38, %v2759_v33  ;;  %v5241_v44 = vpop.f32.mrb[13].mxu1  ;;  %v2364_v33 = vld [vmem:[%s848_s27] sm:$0xff] }
 0x301   : > { %v3493_v35 = vand.u32 4294901760, %v2364_v33  ;;  %v4867_v44 = vld [vmem:[%s6423_s28] ss:$0 sm:$0xff]  ;;  %s4848_s28 = sshll.u32 %s6420_s2, 3 }
 0x302   : > { %s810_s0 = scalar_lea.vmem [#allocation11], %s4848_s28 }
 0x303   : > { %v2909_v48 = vpop.f32.mrb[14].mxu1  ;;  %v3570_v37 = vsub.f32 %v2364_v33, %v3493_v35  ;;  %5273 = vmatpush3.msra.mxu0 %v3493_v35  ;;  %s4538_s14 = sshll.u32 %s810_s0, 4  ;;  %s6923_s14 = int_to_ptr.vmem [resolvable:$true] %s4538_s14 }
 0x304   : > { %v2910_v49 = vadd.f32 %v2909_v48, %v2831_v43  ;;  %v5246_v27 = vpop.f32.mrb[15].mxu1  ;;  %5282 = vmatprep.subr.mxu0 %v5954_v1  ;;  %v4428_v48 = vsub.s32 6, %v6662_v26  ;;  %s5785_s13 = scalar_lea.vmem %s6923_s14, 128  ;;  %p5792_p13 = scmp.lt.s32.totalorder %s6923_s14, %s5790_s24 }
 0x305   : > { %v3571_v36 = vand.u32 4294901760, %v3570_v37  ;;  %p5786_p2 = scmp.ne.s32.totalorder %s6923_s14, %s5785_s13  ;;  %p5793_p5 = scmp.lt.s32.totalorder %s5791_s30, %s5785_s13 }
 0x307   : > { %v2985_v47 = vpop.f32.mrb[16].mxu1  ;;  %v3572_v38 = vsub.f32 %v3570_v37, %v3571_v36  ;;  %p5787_p12 = pnand %p5786_p2, %p7138_p8  ;;  %p5794_p0 = por %p5793_p5, %p5792_p13 }
 0x308   : > { %v2986_v52 = vadd.f32 %v2985_v47, %v2910_v49  ;;  %v5251_v53 = vpop.f32.mrb[17].mxu1 }
 0x309   : > { %v3573_v39 = vand.u32 4294901760, %v3572_v38  ;;  %p5788_p10 = pneg %p5787_p12 }
 0x30b   : > { %v3059_v56 = vpop.f32.mrb[18].mxu1  ;;  %5278 = vmatpush3.msra.mxu1 %v3573_v39  ;;  %p5795_p3 = pnand %p5794_p0, %p5788_p10 }
 0x30c   : > { %v3060_v59 = vadd.f32 %v3059_v56, %v2986_v52  ;;  %v5256_v60 = vpop.f32.mrb[19].mxu1  ;;  %5287 = vmatprep.subr.mxu1 %v5954_v1 }
 0x30f   : > { %v3133_v63 = vpop.f32.mrb[20].mxu1 }
 0x310   : > { %v3134_v4 = vadd.f32 %v3133_v63, %v3060_v59  ;;  %v5261_v5 = vpop.f32.mrb[21].mxu1  ;;  %v4407_v59 = vsub.s32 3, %v6662_v26 }
 0x311   : > { %v4435_v5 = vsub.s32 7, %v6662_v26 }
 0x313   : > { %v3207_v11 = vpop.f32.mrb[22].mxu1 }
 0x314   : > { %v3208_v12 = vadd.f32 %v3207_v11, %v3134_v4  ;;  %v5266_v13 = vpop.f32.mrb[23].mxu1  ;;  %v2374_v11 = vld [vmem:[%s6425_s17 + $0x8] sm:$0xff] }
 0x315   : > { %v2373_v13 = vld [vmem:[%s6425_s17] sm:$0xff] }
 0x317   : > { %v3279_v3 = vpop.f32.mrb[24].mxu1 }
 0x318   : > { %v3280_v18 = vadd.f32 %v3279_v3, %v3208_v12  ;;  %v5271_v42 = vpop.f32.mrb[25].mxu1  ;;  %v2375_v12 = vld [vmem:[%s6425_s17 + $0x10] sm:$0xff]  ;;  %v2377_v3 = vld [vmem:[%s6425_s17 + $0x20] sm:$0xff] }
 0x319   : > { %v2378_v42 = vld [vmem:[%s6425_s17 + $0x28] sm:$0xff] }
 0x31a   : > { %v3461_v17 = vadd.f32 %v3459_v50, %v3280_v18 }
 0x31c   : > { %v3462_v19 = vmul.f32 0.25, %v3461_v17 }
 0x31e   : > { %v3476_v22 = vsel %vm3475_vm15, -4.2949673e+09, %v3462_v19 }
 0x31f   : > { %v3478_v23 = vsel %vm3477_vm1, %v3476_v22, -inf }
 0x320   : > { %3479 = vmax.xlane.f32.xlu1 %v3478_v23 }
 0x344   : > { %v2359_v25 = vpop.f32.mrb[2].mxu0 }
 0x345   : > { %v5211_v28 = vpop.f32.mrb[3].mxu0  ;;  %v5442_v45 = vadd.f32 %v4867_v44, %v2359_v25  ;;  %v2380_v25 = vld [vmem:[%s6425_s17 + $0x38] sm:$0xff] }
 0x347   : > { %v3939_v46 = vand.u32 4294901760, %v5442_v45 }
 0x349   : > { %v6831_v27 = vsub.f32 %v5442_v45, %v3939_v46 }
 0x34b   : > { %v4017_v52 = vand.u32 4294901760, %v6831_v27 }
 0x34d   : > { %v4018_v56 = vsub.f32 %v6831_v27, %v4017_v52 }
 0x34f   : > { %v4019_v41 = vand.u32 4294901760, %v4018_v56 }
 0x3ad   : > { %v3480_v29 = vpop.xlane.xlu1 %3479 }
 0x3ae   : > { %v3481_v30 = vsub.f32 %v3476_v22, %v3480_v29  ;;  %v2379_v29 = vld [vmem:[%s6425_s17 + $0x30] sm:$0xff]  ;;  %s4869_s17 = sshll.u32 %s7123_s22, 1 }
 0x3af   : > { %s4534_s11 = sadd.s32 %s7124_s4, %s4869_s17 }
 0x3b0   : > { %v3482_v31 = vmul.f32 1.442695, %v3481_v30  ;;  %s4870_s22 = sshll.u32 %s4534_s11, 7 }
 0x3b1   : > { %s6921_s9 = scalar_lea.hbm %s7137_s12, %s4870_s22 }
 0x3b2   : > { %5633 = vpow2.f32 %v3482_v31 }
 0x3bc   : > { %v5634_v0 = vpop.eup %5633 }
 0x3bd   : > { %v3484_v32 = vsel %vm3477_vm1, %v5634_v0, 0.0 }
 0x3be   : > { %3485 = vadd.xlane.f32.xlu1 %v3484_v32 }
 0x44b   : > { %v3486_v43 = vpop.xlane.xlu1 %3485 }
 0x44c   : > { %5635 = vrcp.f32 %v3486_v43 }
 0x456   : > { %v5636_v49 = vpop.eup %5635 }
 0x457   : > { %v6833_v20 = vmul.f32 %v5636_v49, %v5634_v0 }
 0x459   : > { %v4429_v34 = vrot.slane %v6833_v20, %v4428_v48  ;;  %v4387_v21 = vrot.slane %v6833_v20, %v6677_v40  ;;  %v3490_v47 = vsel %vm3477_vm1, %v6833_v20, 0  ;;  %v4394_v54 = vrot.slane %v6833_v20, %v4393_v51 }
 0x45a   : > { %v6841_v24 = vand.u32 4294901760, %v3490_v47  ;;  %v4400_v40 = vsub.s32 2, %v6662_v26  ;;  %v4408_v61 = vrot.slane %v6833_v20, %v4407_v59  ;;  %v4415_v63 = vrot.slane %v6833_v20, %v4414_v62 }
 0x45b   : > { %4431 = vbcast.lane.b32.xlu0 %v4429_v34, 256  ;;  %4389 = vbcast.lane.b32.xlu1 %v4387_v21, 256  ;;  %v4422_v4 = vrot.slane %v6833_v20, %v4421_v2  ;;  %v4436_v6 = vrot.slane %v6833_v20, %v4435_v5 }
 0x45c   : > { %5280 = vmatmul.mubr.f32.vlgmr.msra.gmra.mrb[26].mxu1 %v6841_v24  ;;  %v3559_v53 = vsub.f32 %v3490_v47, %v6841_v24  ;;  %v4401_v58 = vrot.slane %v6833_v20, %v4400_v40 }
 0x45d   : > { %5288 = vmatpush3.msra.mxu1 %v3493_v35  ;;  %5289 = vmatprep.mubr.msk.f32.mxu1 %vm5953_vm0, %v5954_v1 }
 0x45e   : > { %v3560_v55 = vand.u32 4294901760, %v3559_v53  ;;  %5297 = vmatprep.subr.mxu1 %v5954_v1 }
 0x45f   : > { %4396 = vbcast.lane.b32.xlu1 %v4394_v54, 256 }
 0x460   : > { %5290 = vmatmul.mubr.f32.vlgmr.msra.gmra.mrb[28].mxu1 %v3560_v55  ;;  %v3561_v57 = vsub.f32 %v3559_v53, %v3560_v55 }
 0x461   : > { %5298 = vmatpush3.msra.mxu1 %v3493_v35  ;;  %5299 = vmatprep.mubr.msk.f32.mxu1 %vm5953_vm0, %v5954_v1 }
 0x462   : > { %5307 = vmatprep.subr.mxu1 %v5954_v1  ;;  %v3562_v60 = vand.u32 4294901760, %v3561_v57 }
 0x463   : > { %4403 = vbcast.lane.b32.xlu1 %v4401_v58, 256 }
 0x464   : > { %5275 = vmatmul.mubr.f32.vlgmr.msra.gmra.mrb[4].mxu0 %v3562_v60  ;;  %5300 = vmatmul.mubr.f32.vlgmr.msra.gmra.mrb[30].mxu1 %v6841_v24 }
 0x465   : > { %5308 = vmatpush3.msra.mxu1 %v4019_v41  ;;  %5283 = vmatpush3.msra.mxu0 %v3570_v37 }
 0x466   : > { %5284 = vmatprep.mubr.msk.f32.mxu0 %vm5953_vm0, %v5954_v1  ;;  %5309 = vmatprep.mubr.msk.f32.mxu1 %vm5953_vm0, %v5954_v1 }
 0x467   : > { %4410 = vbcast.lane.b32.xlu1 %v4408_v61, 256  ;;  %5317 = vmatprep.subr.mxu1 %v5954_v1 }
 0x468   : > { %5285 = vmatmul.mubr.f32.vlgmr.msra.gmra.mrb[6].mxu0 %v3559_v53  ;;  %5292 = vmatprep.subr.mxu0 %v5954_v1 }
 0x469   : > { %5310 = vmatmul.mubr.f32.vlgmr.msra.gmra.mrb[32].mxu1 %v6841_v24  ;;  %5293 = vmatpush3.msra.mxu0 %v3571_v36 }
 0x46a   : > { %5318 = vmatpush3.msra.mxu1 %v3939_v46  ;;  %5294 = vmatprep.mubr.msk.f32.mxu0 %vm5953_vm0, %v5954_v1 }
 0x46b   : > { %4417 = vbcast.lane.b32.xlu1 %v4415_v63, 256  ;;  %5302 = vmatprep.subr.mxu0 %v5954_v1 }
 0x46c   : > { %5319 = vmatprep.mubr.msk.f32.mxu1 %vm5953_vm0, %v5954_v1  ;;  %5327 = vmatprep.subr.mxu1 %v5954_v1 }
 0x46d   : > { %5295 = vmatmul.mubr.f32.vlgmr.msra.gmra.mrb[8].mxu0 %v6841_v24  ;;  %5320 = vmatmul.mubr.f32.vlgmr.msra.gmra.mrb[34].mxu1 %v3560_v55 }
 0x46e   : > { %5303 = vmatpush3.msra.mxu0 %v3939_v46  ;;  %5328 = vmatpush3.msra.mxu1 %v3939_v46 }
 0x46f   : > { %4424 = vbcast.lane.b32.xlu1 %v4422_v4, 256  ;;  %5304 = vmatprep.mubr.msk.f32.mxu0 %vm5953_vm0, %v5954_v1 }
 0x470   : > { %5312 = vmatprep.subr.mxu0 %v5954_v1  ;;  %5329 = vmatprep.mubr.msk.f32.mxu1 %vm5953_vm0, %v5954_v1 }
 0x471   : > { %5305 = vmatmul.mubr.f32.vlgmr.msra.gmra.mrb[10].mxu0 %v3562_v60  ;;  %5330 = vmatmul.mubr.f32.vlgmr.msra.gmra.mrb[36].mxu1 %v6841_v24 }
 0x472   : > { %5313 = vmatpush3.msra.mxu0 %v6831_v27  ;;  %5314 = vmatprep.mubr.msk.f32.mxu0 %vm5953_vm0, %v5954_v1 }
 0x473   : > { %4438 = vbcast.lane.b32.xlu1 %v4436_v6, 256  ;;  %5322 = vmatprep.subr.mxu0 %v5954_v1 }
 0x475   : > { %5315 = vmatmul.mubr.f32.vlgmr.msra.gmra.mrb[12].mxu0 %v3559_v53 }
 0x476   : > { %5323 = vmatpush3.msra.mxu0 %v4017_v52  ;;  %5324 = vmatprep.mubr.msk.f32.mxu0 %vm5953_vm0, %v5954_v1 }
 0x479   : > { %5325 = vmatmul.mubr.f32.vlgmr.msra.gmra.mrb[14].mxu0 %v6841_v24 }
 0x4cd   : > { %v4390_v26 = vpop.permute.xlu1 %4389  ;;  %v4432_v30 = vpop.permute.xlu0 %4431 }
 0x4ce   : > { %v4440_v50 = vmul.f32 %v4390_v26, %v2373_v13  ;;  %v4446_v43 = vmul.f32 %v4432_v30, %v2379_v29 }
 0x4d0   : > { %v4448_v31 = vsel %vm2381_vm2, %v4440_v50, 0.0  ;;  %v4490_v47 = vsel %vm2381_vm2, %v4446_v43, 0.0 }
 0x4d1   : > { %v4397_v7 = vpop.permute.xlu1 %4396  ;;  %v4449_v44 = vrot.slane %v4448_v31, 4  ;;  %v4491_v60 = vrot.slane %v4490_v47, 4 }
 0x4d2   : > { %v4441_v16 = vmul.f32 %v4397_v7, %v2374_v11 }
 0x4d3   : > { %v4450_v51 = vadd.f32 %v4449_v44, %v4448_v31 }
 0x4d4   : > { %v4455_v19 = vsel %vm2381_vm2, %v4441_v16, 0.0 }
 0x4d5   : > { %v4404_v8 = vpop.permute.xlu1 %4403  ;;  %v4456_v33 = vrot.slane %v4455_v19, 4  ;;  %v4451_v61 = vrot.slane %v4450_v51, 2 }
 0x4d6   : > { %v4442_v18 = vmul.f32 %v4404_v8, %v2375_v12 }
 0x4d7   : > { %v4457_v49 = vadd.f32 %v4456_v33, %v4455_v19  ;;  %v4452_v12 = vadd.f32 %v4451_v61, %v4450_v51 }
 0x4d8   : > { %v4462_v23 = vsel %vm2381_vm2, %v4442_v18, 0.0 }
 0x4d9   : > { %v4411_v9 = vpop.permute.xlu1 %4410  ;;  %v4463_v36 = vrot.slane %v4462_v23, 4  ;;  %v4458_v40 = vrot.slane %v4457_v49, 2 }
 0x4da   : > { %v4443_v1 = vmul.f32 %v4411_v9, %v2376_v14  ;;  %v4492_v9 = vadd.f32 %v4491_v60, %v4490_v47 }
 0x4db   : > { %v4464_v34 = vadd.f32 %v4463_v36, %v4462_v23  ;;  %v4459_v4 = vadd.f32 %v4458_v40, %v4457_v49 }
 0x4dc   : > { %v4469_v0 = vsel %vm2381_vm2, %v4443_v1, 0.0  ;;  %v4493_v1 = vrot.slane %v4492_v9, 2 }
 0x4dd   : > { %v4418_v10 = vpop.permute.xlu1 %4417  ;;  %v4470_v45 = vrot.slane %v4469_v0, 4  ;;  %v4465_v41 = vrot.slane %v4464_v34, 2  ;;  %v4460_v16 = vrot.slane %v4459_v4, 1 }
 0x4de   : > { %v4444_v17 = vmul.f32 %v4418_v10, %v2377_v3 }
 0x4df   : > { %v4471_v24 = vadd.f32 %v4470_v45, %v4469_v0  ;;  %v4466_v10 = vadd.f32 %v4465_v41, %v4464_v34  ;;  %v4461_v31 = vadd.f32 %v4460_v16, %v4459_v4 }
 0x4e0   : > { %v4476_v35 = vsel %vm2381_vm2, %v4444_v17, 0.0 }
 0x4e1   : > { %v4425_v15 = vpop.permute.xlu1 %4424  ;;  %v4477_v46 = vrot.slane %v4476_v35, 4  ;;  %v4472_v62 = vrot.slane %v4471_v24, 2  ;;  %v4467_v17 = vrot.slane %v4466_v10, 1 }
 0x4e2   : > { %v4445_v22 = vmul.f32 %v4425_v15, %v2378_v42 }
 0x4e3   : > { %v4478_v52 = vadd.f32 %v4477_v46, %v4476_v35  ;;  %v4473_v13 = vadd.f32 %v4472_v62, %v4471_v24  ;;  %v4468_v36 = vadd.f32 %v4467_v17, %v4466_v10 }
 0x4e4   : > { %v4483_v38 = vsel %vm2381_vm2, %v4445_v22, 0.0 }
 0x4e5   : > { %v4439_v28 = vpop.permute.xlu1 %4438  ;;  %v4484_v27 = vrot.slane %v4483_v38, 4  ;;  %v4479_v63 = vrot.slane %v4478_v52, 2 }
 0x4e6   : > { %v4447_v39 = vmul.f32 %v4439_v28, %v2380_v25  ;;  %v4453_v25 = vrot.slane %v4452_v12, 1  ;;  %v4474_v28 = vrot.slane %v4473_v13, 1 }
 0x4e7   : > { %v4485_v55 = vadd.f32 %v4484_v27, %v4483_v38  ;;  %v4480_v15 = vadd.f32 %v4479_v63, %v4478_v52 }
 0x4e8   : > { %v4497_v21 = vsel %vm2381_vm2, %v4447_v39, 0.0  ;;  %v4454_v44 = vadd.f32 %v4453_v25, %v4452_v12  ;;  %v4475_v45 = vadd.f32 %v4474_v28, %v4473_v13 }
 0x4e9   : > { %v4498_v56 = vrot.slane %v4497_v21, 4  ;;  %v4486_v5 = vrot.slane %v4485_v55, 2  ;;  %v4481_v29 = vrot.slane %v4480_v15, 1 }
 0x4ea   : > { %v4512_v49 = vsel %vm3446_vm4, %v4461_v31, %v4454_v44 }
 0x4eb   : > { %v4499_v6 = vadd.f32 %v4498_v56, %v4497_v21  ;;  %v4487_v3 = vadd.f32 %v4486_v5, %v4485_v55  ;;  %v4482_v46 = vadd.f32 %v4481_v29, %v4480_v15  ;;  %v4513_v47 = vsel %vm3448_vm5, %v4468_v36, %v4512_v49 }
 0x4ec   : > { %v4514_v52 = vsel %vm3450_vm6, %v4475_v45, %v4513_v47 }
 0x4ed   : > { %v4500_v18 = vrot.slane %v4499_v6, 2  ;;  %v4488_v0 = vrot.slane %v4487_v3, 1 }
 0x4ef   : > { %v4489_v27 = vadd.f32 %v4488_v0, %v4487_v3 }
 0x52f   : > { %v3640_v32 = vpop.f32.mrb[26].mxu1 }
 0x530   : > { %v5281_v37 = vpop.f32.mrb[27].mxu1 }
 0x531   : > { %v4494_v37 = vadd.f32 %v4493_v1, %v4492_v9 }
 0x533   : > { %v3788_v48 = vpop.f32.mrb[28].mxu1  ;;  %v4495_v21 = vrot.slane %v4494_v37, 1 }
 0x534   : > { %v5291_v20 = vpop.f32.mrb[29].mxu1 }
 0x537   : > { %v3564_v53 = vpop.f32.mrb[4].mxu0  ;;  %v3934_v54 = vpop.f32.mrb[30].mxu1 }
 0x538   : > { %v3641_v57 = vadd.f32 %v3640_v32, %v3564_v53  ;;  %v5276_v58 = vpop.f32.mrb[5].mxu0  ;;  %v5301_v59 = vpop.f32.mrb[31].mxu1  ;;  %v4501_v32 = vadd.f32 %v4500_v18, %v4499_v6  ;;  %v4515_v53 = vsel %vm3452_vm7, %v4482_v46, %v4514_v52 }
 0x539   : > { %v4516_v56 = vsel %vm3454_vm8, %v4489_v27, %v4515_v53 }
 0x53a   : > { %v4502_v20 = vrot.slane %v4501_v32, 1 }
 0x53b   : > { %v3714_v2 = vpop.f32.mrb[6].mxu0 }
 0x53c   : > { %v3715_v26 = vadd.f32 %v3714_v2, %v3641_v57  ;;  %v4086_v7 = vpop.f32.mrb[32].mxu1  ;;  %v5286_v8 = vpop.f32.mrb[7].mxu0  ;;  %v4503_v40 = vadd.f32 %v4502_v20, %v4501_v32  ;;  %v4496_v57 = vadd.f32 %v4495_v21, %v4494_v37 }
 0x53d   : > { %v5311_v11 = vpop.f32.mrb[33].mxu1 }
 0x53e   : > { %v3789_v14 = vadd.f32 %v3788_v48, %v3715_v26  ;;  %v4517_v41 = vsel %vm3456_vm9, %v4496_v57, %v4516_v56 }
 0x53f   : > { %v4518_v61 = vsel %vm3458_vm12, %v4503_v40, %v4517_v41 }
 0x540   : > { %v3862_v42 = vpop.f32.mrb[8].mxu0  ;;  %v4234_v50 = vpop.f32.mrb[34].mxu1 }
 0x541   : > { %v3863_v19 = vadd.f32 %v3862_v42, %v3789_v14  ;;  %v5296_v22 = vpop.f32.mrb[9].mxu0  ;;  %v5321_v23 = vpop.f32.mrb[35].mxu1 }
 0x543   : > { %v3935_v30 = vadd.f32 %v3934_v54, %v3863_v19 }
 0x544   : > { %v4010_v33 = vpop.f32.mrb[10].mxu0  ;;  %v4380_v35 = vpop.f32.mrb[36].mxu1 }
 0x545   : > { %v4011_v38 = vadd.f32 %v4010_v33, %v3935_v30  ;;  %v5306_v39 = vpop.f32.mrb[11].mxu0  ;;  %v5331_v43 = vpop.f32.mrb[37].mxu1 }
 0x547   : > { %v4087_v48 = vadd.f32 %v4086_v7, %v4011_v38 }
 0x548   : > { %v4160_v34 = vpop.f32.mrb[12].mxu0 }
 0x549   : > { %v4161_v51 = vadd.f32 %v4160_v34, %v4087_v48  ;;  %v5316_v24 = vpop.f32.mrb[13].mxu0 }
 0x54b   : > { %v4235_v54 = vadd.f32 %v4234_v50, %v4161_v51 }
 0x54c   : > { %v4308_v55 = vpop.f32.mrb[14].mxu0 }
 0x54d   : > { %v4309_v58 = vadd.f32 %v4308_v55, %v4235_v54  ;;  %v5326_v59 = vpop.f32.mrb[15].mxu0 }
 0x54f   : > { %v4381_v60 = vadd.f32 %v4380_v35, %v4309_v58 }
 0x551   : > { %v4520_v62 = vadd.f32 %v4518_v61, %v4381_v60 }
 0x553   : > { %4521 = vst.msk [vmem:[%s810_s0] sm:$0xff] %vm2381_vm2, %v4520_v62 }
 0x554   : > { %5798 = shalt.err (!%p5795_p3)
}
 0x555   : > { %s5799_s2 = scalar_lea.hbm %s6921_s9, 128  ;;  %s5803_s5 = scalar_lea.hbm %s7137_s12, 512 }
 0x556   : > { %p5800_p1 = scmp.ne.s32.totalorder %s6921_s9, %s5799_s2  ;;  %p5804_p9 = scmp.lt.u32.totalorder %s6921_s9, %s7137_s12 }
 0x557   : > { %p5805_p4 = scmp.lt.u32.totalorder %s5803_s5, %s5799_s2  ;;  %p5807_p2 = scmp.lt.u32.totalorder %s5799_s2, %s6921_s9 }
 0x558   : > { %p5801_p11 = pnand %p5800_p1, %p7138_p8 }
 0x559   : > { %p5806_p6 = por %p5805_p4, %p5804_p9 }
 0x55a   : > { %p5802_p7 = pneg %p5801_p11 }
 0x55b   : > { %p5808_p12 = por %p5807_p2, %p5806_p6 }
 0x55d   : > { %p5809_p10 = pnand %p5808_p12, %p5802_p7 }
 0x55f   : > { %5812 = shalt.err (!%p5809_p10)
}
 0x560   : > { %5485 = dma.vmem_to_hbm [thread:$0]  (%p7138_p8), %s6923_s14, 128, %s6921_s9, %s4523_s18  }
 0x561 PF: > { %s7139_s27 = sld [smem:[#allocation17_spill]]  ;;  %s7140_s28 = sld [smem:[#allocation27_spill]] }
 0x562   : > { %p5511_p13 = scmp.ge.s32.totalorder %s5943_s16, 2 }
 0x567   : > { %s4550_s17 = sand.u32 1, %s7139_s27   ;;  %p7141_p5 = scmp.ne.s32.totalorder %s7140_s28, 0 }
 0x568   : > { %s4551_s11 = scalar_lea.sflag [#allocation4], %s4550_s17 }
 0x569   : > { %p5505_p0 = pnand %p5511_p13, %p7141_p5 }
 0x56b   : > { %5886 = dma.done.wait (!%p5505_p0), %s4551_s11, 128  }
 0x56c   : > { %5888 = vsyncadd (!%p5505_p0), %s4551_s11, 4294967168  ;;  %s37_s16 = sadd.s32 1, %s5943_s16   ;;  %s7143_s18 = sld [smem:[#allocation18_spill]] }
 0x56d   : > { %p6953_p3 = scmp.ge.s32.totalorder %s37_s16, 6   ;;  %s7144_s21 = sld [smem:[#allocation19_spill]] }
 0x56e   : > { %s7145_s0 = smov %s6280_s19  ;;  %s7146_s24 = sld [smem:[#allocation20_spill]] }
 0x56f   : > { %s7147_s28 = sld [smem:[#allocation23_spill]]  ;;  %s7148_s14 = sld [smem:[#allocation29_spill]] }
 0x570   : > { %s7149_s30 = sld [smem:[#allocation31_spill]]  ;;  %s7151_s19 = smov %s5899_s20 }
 0x571   : > { %s7152_s20 = smov %s6283_s6  ;;  %s7153_s22 = smov %s5911_s23 }
 0x572   : > { %s7154_s23 = smov %s7145_s0  ;;  %s7155_s25 = smov %s5923_s26 }
 0x573   : > { %s7156_s26 = smov %s6273_s10  ;;  %s7157_s27 = smov %s5935_s29 }
 0x574   :  { %36 = sbr.rel (!%p6953_p3) target bundleno = 31 (0x1f), region = 196 }
 0x575   : > { %s7158_s29 = smov %s7148_s14 }
 0x57b   :  { %4556 = vsyncpa [#allocation3], 1 }
 0x57c   :  { %4558 = vsyncpa [#allocation3 + $0x1], 1 }
 0x57d   :  { %4559 = vsyncpa [#allocation6], 1 }
 0x57e   :  { %4561 = vsyncpa [#allocation6 + $0x1], 1 }
 0x57f   :  { %4562 = vsyncpa [#allocation9], 1 }
 0x580   :  { %4564 = vsyncpa [#allocation9 + $0x1], 1 }
 0x581   :  { %4565 = vsyncpa [#allocation4], 1 }
 0x582   :  { %4567 = vsyncpa [#allocation4 + $0x1], 1 }

</bundles_post_ra>
